<compile_context>
chip_gen: v5e
topology: v5e:2x2
jax: 0.10.0
libtpu: 0.0.40
codegen_flags: <defaults>
</compile_context>

<pallas_src>
import jax
import jax.numpy as jnp
import numpy as np
from jax.experimental import pallas as pl
from jax.experimental.pallas import tpu as pltpu


# ----------------------------------------------------------------------------
# Kernel
# ----------------------------------------------------------------------------
def _make_kernel(num_heads: int, block_b: int, seq_len: int, embed_dim: int,
                 compute_dtype, eps: float = 1e-5):
    cdt = jnp.dtype(compute_dtype)
    H = num_heads
    E = embed_dim
    hd = E // H
    rows = block_b * seq_len

    def layer_norm(v, g, b):
        mu = jnp.mean(v, axis=-1, keepdims=True)
        c = v - mu
        var = jnp.mean(c * c, axis=-1, keepdims=True)
        return c * jax.lax.rsqrt(var + eps) * g + b

    def kernel(x_ref,                 # (bb, T, E) f32
               g0_ref, b0_ref,        # (1, E)           LN0
               wqkv_ref, bqkv_ref,    # (E, 3E) cdt, (1, 3E) f32 (q scaling folded)
               wo_ref, bo_ref,        # (E, E) cdt,  (1, E) f32
               g1_ref, b1_ref,        # (1, E)           LN1
               w1_ref, fb1_ref,       # (E, 2E) cdt, (1, 2E) f32
               w2_ref, fb2_ref,       # (2E, E) cdt, (1, E) f32
               o_ref,                 # (bb, T, E) f32
               ctx_ref):              # (rows, E) cdt VMEM scratch
        # Hoist small constants once per grid step (no re-broadcast in loops).
        g0 = g0_ref[...]
        b0 = b0_ref[...]
        g1 = g1_ref[...]
        b1 = b1_ref[...]
        bqkv = bqkv_ref[...]
        bo = bo_ref[...]
        fb1 = fb1_ref[...]
        fb2 = fb2_ref[...]

        # Collapse batch into the matmul M dimension: (bb, T, E) -> (bb*T, E).
        x = x_ref[...].reshape(rows, E)
        xn = layer_norm(x, g0, b0)
        xnc = xn.astype(cdt)

        # Fused QKV projection: one (rows, E) x (E, 3E) MXU matmul.
        qkv = jnp.dot(xnc, wqkv_ref[...],
                      preferred_element_type=jnp.float32) + bqkv
        q = qkv[:, :E]
        k = qkv[:, E:2 * E]
        v = qkv[:, 2 * E:]

        # Per-head attention (H is small; module default = 2).  Static lane
        # offsets keep slicing cheap; per-head state is flushed to the VMEM
        # ctx scratch so no large accumulator is carried across iterations.
        for h in range(H):
            lo = h * hd
            qh = q[:, lo:lo + hd].reshape(block_b, seq_len, hd).astype(cdt)
            kh = k[:, lo:lo + hd].reshape(block_b, seq_len, hd).astype(cdt)
            vh = v[:, lo:lo + hd].reshape(block_b, seq_len, hd).astype(cdt)

            # scores (bb, T, T); 1/sqrt(hd) already folded into the q weights
            s = jnp.einsum("btd,bsd->bts", qh, kh,
                           preferred_element_type=jnp.float32)
            s = s - jnp.max(s, axis=-1, keepdims=True)
            p = jnp.exp(s)
            denom = jnp.sum(p, axis=-1, keepdims=True)
            r = pl.reciprocal(denom, approx=True)     # EUP slot, off the VPU path
            r = r * (2.0 - denom * r)                 # one Newton step, (bb,T,1) only
            p = p * r

            ctx = jnp.einsum("bts,bsd->btd", p.astype(cdt), vh,
                             preferred_element_type=jnp.float32)   # (bb, T, hd)
            ctx_ref[:, lo:lo + hd] = ctx.reshape(rows, hd).astype(cdt)

        # Single fused out-projection over all heads.
        attn = jnp.dot(ctx_ref[...], wo_ref[...],
                       preferred_element_type=jnp.float32) + bo
        x1 = x + attn                                  # residual (dropout = id)

        # FFN: LN -> fc1 -> ReLU -> fc2 -> residual.
        xn2 = layer_norm(x1, g1, b1)
        hmid = jnp.dot(xn2.astype(cdt), w1_ref[...],
                       preferred_element_type=jnp.float32) + fb1
        hmid = jnp.maximum(hmid, 0.0)
        hout = jnp.dot(hmid.astype(cdt), w2_ref[...],
                       preferred_element_type=jnp.float32) + fb2

        o_ref[...] = (x1 + hout).reshape(block_b, seq_len, E).astype(o_ref.dtype)

    return kernel


# ----------------------------------------------------------------------------
# Wrapper helpers
# ----------------------------------------------------------------------------
def _default_block_b(B, T, E):
    """Pick bb: keep >= 2 grid steps (v7x megacore) and big row counts."""
    if B <= 1:
        return max(B, 1)
    per_batch_bytes = 4 * T * E * 4          # in+out, double-buffered, f32
    max_bb = max(1, (24 << 20) // per_batch_bytes)
    best = 1
    for bb in range(1, B // 2 + 1):          # bb <= B//2 -> grid >= 2
        if B % bb == 0 and bb <= max_bb:
            best = bb
            if bb * T >= 1024:
                break
    return best


def _vmem_limit_bytes(T, bb, E, consts, cdt_itemsize, single_buf):
    act = 2 * 2 * (bb * T * E * 4)           # x + out blocks, double buffered
    w = sum(int(np.prod(a.shape)) * jnp.dtype(a.dtype).itemsize for a in consts)
    w *= 1 if single_buf else 2
    scratch = bb * T * E * cdt_itemsize
    headroom = 6 * bb * T * E * 4 + (4 << 20)   # qkv/ffn temporaries + compiler scratch
    est = act + w + scratch + headroom
    return int(min(64 << 20, max(est, 32 << 20)))


# ----------------------------------------------------------------------------
# Wrapper
# ----------------------------------------------------------------------------
def multimodal_transformer_pallas(x_bte, kp, *, num_heads, block_b=None,
                                  vmem_limit_bytes=None,
                                  single_buffer_weights=True):
    """x_bte: (B, T, E) float32 (batch-major layout).  Returns (B, T, E) f32.

    `kp` are kernel params from prepare_params(); their matmul-weight dtype
    sets the MXU compute dtype (float32 or bfloat16).  Callers holding the
    PyTorch (T, B, E) layout should transpose once outside this function.
    """
    B, T, E = x_bte.shape
    assert E % num_heads == 0
    compute_dtype = kp["w_qkv"].dtype

    bb = _default_block_b(B, T, E) if block_b is None else block_b
    assert B % bb == 0, "block_b must divide the batch"

    order = ("ln0_g", "ln0_b", "w_qkv", "b_qkv", "w_out", "b_out",
             "ln1_g", "ln1_b", "w1", "b1", "w2", "b2")
    consts = [kp[name] for name in order]

    kernel = _make_kernel(num_heads, bb, T, E, compute_dtype)

    def run(single_buf):
        def const_spec(arr):
            nd = arr.ndim
            kwargs = {}
            if single_buf:
                # Constant-index blocks never change across the grid; a single
                # buffer halves their VMEM footprint (matters for big E on
                # v7x's 64 MiB VMEM).
                kwargs["pipeline_mode"] = pl.Buffered(1)
            return pl.BlockSpec(arr.shape, lambda b: (0,) * nd, **kwargs)

        vmem = (vmem_limit_bytes if vmem_limit_bytes is not None else
                _vmem_limit_bytes(T, bb, E, consts,
                                  jnp.dtype(compute_dtype).itemsize, single_buf))

        grid_spec = pltpu.PrefetchScalarGridSpec(
            num_scalar_prefetch=0,
            grid=(B // bb,),
            in_specs=[pl.BlockSpec((bb, T, E), lambda b: (b, 0, 0))]
                     + [const_spec(a) for a in consts],
            out_specs=pl.BlockSpec((bb, T, E), lambda b: (b, 0, 0)),
            scratch_shapes=[pltpu.VMEM((bb * T, E), compute_dtype)],
        )
        return pl.pallas_call(
            kernel,
            out_shape=jax.ShapeDtypeStruct((B, T, E), jnp.float32),
            grid_spec=grid_spec,
            compiler_params=pltpu.CompilerParams(
                dimension_semantics=("parallel",),
                vmem_limit_bytes=vmem),
        )(x_bte, *consts)

    if single_buffer_weights:
        try:
            return run(True)
        except Exception:
            # pipeline_mode=pl.Buffered(1) unsupported on this jax/backend:
            # fall back to the standard double-buffered constant specs.
            pass
    return run(False)


# ----------------------------------------------------------------------------
# Host-side parameter preparation (pack QKV, transpose, fold scaling, cast).
# ----------------------------------------------------------------------------
def prepare_params(p, num_heads, compute_dtype=jnp.float32):
    E = p["ln0_g"].shape[-1]
    hd = E // num_heads
    scaling = float(hd) ** -0.5

    w_in = jnp.asarray(p["w_in"], jnp.float32)        # (3E, E) torch layout
    b_in = jnp.asarray(p["b_in"], jnp.float32)        # (3E,)
    # (E, 3E): columns [0:E] = Q (heads as hd-wide groups), [E:2E] = K, [2E:] = V
    w_qkv = w_in.T
    scale = jnp.concatenate([jnp.full((E,), scaling, jnp.float32),
                             jnp.ones((2 * E,), jnp.float32)])
    w_qkv = w_qkv * scale[None, :]                    # fold 1/sqrt(hd) into q
    b_qkv = (b_in * scale).reshape(1, 3 * E)

    return {
        "ln0_g": jnp.asarray(p["ln0_g"], jnp.float32).reshape(1, E),
        "ln0_b": jnp.asarray(p["ln0_b"], jnp.float32).reshape(1, E),
        "w_qkv": w_qkv.astype(compute_dtype),
        "b_qkv": b_qkv,
        "w_out": jnp.asarray(p["w_out"], jnp.float32).T.astype(compute_dtype),
        "b_out": jnp.asarray(p["b_out"], jnp.float32).reshape(1, E),
        "ln1_g": jnp.asarray(p["ln1_g"], jnp.float32).reshape(1, E),
        "ln1_b": jnp.asarray(p["ln1_b"], jnp.float32).reshape(1, E),
        "w1": jnp.asarray(p["w1"], jnp.float32).T.astype(compute_dtype),  # (E, 2E)
        "b1": jnp.asarray(p["b1"], jnp.float32).reshape(1, 2 * E),
        "w2": jnp.asarray(p["w2"], jnp.float32).T.astype(compute_dtype),  # (2E, E)
        "b2": jnp.asarray(p["b2"], jnp.float32).reshape(1, E),
    }


# ----------------------------------------------------------------------------
# Pure-JAX reference (torch eval-mode forward, batch-major layout: attention,
# LN and the FFN all act per batch element, so the math is identical).
# ----------------------------------------------------------------------------
def reference_forward(x_bte, p, *, num_heads, eps=1e-5):
    B, T, E = x_bte.shape
    hd = E // num_heads
    scaling = float(hd) ** -0.5

    def ln(v, g, b):
        mu = jnp.mean(v, axis=-1, keepdims=True)
        var = jnp.mean((v - mu) ** 2, axis=-1, keepdims=True)
        return (v - mu) / jnp.sqrt(var + eps) * g + b

    residual = x_bte
    xn = ln(x_bte, p["ln0_g"], p["ln0_b"])
    qkv = xn @ p["w_in"].T + p["b_in"]                 # (B, T, 3E)
    q = qkv[..., :E] * scaling
    k = qkv[..., E:2 * E]
    v = qkv[..., 2 * E:]

    def heads(t):                                      # (B,T,E) -> (B,H,T,hd)
        return jnp.transpose(t.reshape(B, T, num_heads, hd), (0, 2, 1, 3))

    qh, kh, vh = heads(q), heads(k), heads(v)
    w = jax.nn.softmax(jnp.einsum("bhtd,bhsd->bhts", qh, kh), axis=-1)
    a = jnp.einsum("bhts,bhsd->bhtd", w, vh)
    a = jnp.transpose(a, (0, 2, 1, 3)).reshape(B, T, E)
    a = a @ p["w_out"].T + p["b_out"]
    x1 = residual + a

    xn2 = ln(x1, p["ln1_g"], p["ln1_b"])
    h = jax.nn.relu(xn2 @ p["w1"].T + p["b1"])
    h = h @ p["w2"].T + p["b2"]
    return x1 + h


# ----------------------------------------------------------------------------
# Deterministic parameter init (torch-layout shapes, per the module __init__)
# ----------------------------------------------------------------------------
def init_params(key, embed_dim):
    E = embed_dim
    ks = jax.random.split(key, 6)

    def xavier(k, shape):
        fan_out, fan_in = shape
        lim = np.sqrt(6.0 / (fan_in + fan_out))
        return jax.random.uniform(k, shape, jnp.float32, -lim, lim)

    return {
        "ln0_g": jnp.ones((E,), jnp.float32),
        "ln0_b": jnp.zeros((E,), jnp.float32),
        "w_in": xavier(ks[0], (3 * E, E)),             # in_proj_weight
        "b_in": jnp.zeros((3 * E,), jnp.float32),      # in_proj_bias (0-init)
        "w_out": xavier(ks[1], (E, E)),                # out_proj.weight
        "b_out": jnp.zeros((E,), jnp.float32),
        "ln1_g": jnp.ones((E,), jnp.float32),
        "ln1_b": jnp.zeros((E,), jnp.float32),
        "w1": jax.random.normal(ks[2], (2 * E, E), jnp.float32) * 0.05,  # fc1
        "b1": jax.random.normal(ks[3], (2 * E,), jnp.float32) * 0.05,
        "w2": jax.random.normal(ks[4], (E, 2 * E), jnp.float32) * 0.05,  # fc2
        "b2": jax.random.normal(ks[5], (E,), jnp.float32) * 0.05,
    }


if __name__ == "__main__":
    T, B, E, H = 8, 2, 32, 2                 # seq, batch, embed, heads

    key = jax.random.PRNGKey(0)
    kx, kparam = jax.random.split(key)
    x = jax.random.normal(kx, (B, T, E), jnp.float32)   # batch-major layout
    tparams = init_params(kparam, E)
    ref = reference_forward(x, tparams, num_heads=H)

    # 1) f32 compute path, default block_b (-> 2 grid steps): tight check.
    p32 = prepare_params(tparams, H, jnp.float32)
    out32 = jax.block_until_ready(
        multimodal_transformer_pallas(x, p32, num_heads=H))
    np.testing.assert_allclose(np.asarray(out32), np.asarray(ref),
                               rtol=5e-4, atol=5e-4)

    # 2) bf16 compute path, whole batch in one block (grid = 1): exercises the
    #    batch-collapsed (bb*T, E) path; looser tolerance for bf16 rounding.
    p16 = prepare_params(tparams, H, jnp.bfloat16)
    out16 = jax.block_until_ready(
        multimodal_transformer_pallas(x, p16, num_heads=H, block_b=2))
    np.testing.assert_allclose(np.asarray(out16), np.asarray(ref),
                               rtol=5e-2, atol=1e-1)

    print("KERNEL_OK")
</pallas_src>

<mosaic_0001>
module attributes {stable_mosaic.version = 11 : i64} {
  func.func @kernel(%arg0: i32, %arg1: memref<1x8x32xf32, #tpu.memory_space<vmem>>, %arg2: memref<1x32xf32, #tpu.memory_space<vmem>>, %arg3: memref<1x32xf32, #tpu.memory_space<vmem>>, %arg4: memref<32x96xf32, #tpu.memory_space<vmem>>, %arg5: memref<1x96xf32, #tpu.memory_space<vmem>>, %arg6: memref<32x32xf32, #tpu.memory_space<vmem>>, %arg7: memref<1x32xf32, #tpu.memory_space<vmem>>, %arg8: memref<1x32xf32, #tpu.memory_space<vmem>>, %arg9: memref<1x32xf32, #tpu.memory_space<vmem>>, %arg10: memref<32x64xf32, #tpu.memory_space<vmem>>, %arg11: memref<1x64xf32, #tpu.memory_space<vmem>>, %arg12: memref<64x32xf32, #tpu.memory_space<vmem>>, %arg13: memref<1x32xf32, #tpu.memory_space<vmem>>, %arg14: memref<1x8x32xf32, #tpu.memory_space<vmem>>, %arg15: memref<8x32xf32, #tpu.memory_space<vmem>>) attributes {dimension_semantics = [#tpu.dimension_semantics<parallel>], iteration_bounds = array<i64: 2>, scalar_prefetch = 0 : i64, scratch_operands = 1 : i64, tpu.core_type = #tpu.core_type<tc>, window_params = [{transform_indices = @transform_0, window_bounds = array<i64: 1, 8, 32>}, {pipeline_mode = #tpu.pipeline_mode<synchronous>, transform_indices = @transform_1, window_bounds = array<i64: 1, 32>}, {pipeline_mode = #tpu.pipeline_mode<synchronous>, transform_indices = @transform_2, window_bounds = array<i64: 1, 32>}, {pipeline_mode = #tpu.pipeline_mode<synchronous>, transform_indices = @transform_3, window_bounds = array<i64: 32, 96>}, {pipeline_mode = #tpu.pipeline_mode<synchronous>, transform_indices = @transform_4, window_bounds = array<i64: 1, 96>}, {pipeline_mode = #tpu.pipeline_mode<synchronous>, transform_indices = @transform_5, window_bounds = array<i64: 32, 32>}, {pipeline_mode = #tpu.pipeline_mode<synchronous>, transform_indices = @transform_6, window_bounds = array<i64: 1, 32>}, {pipeline_mode = #tpu.pipeline_mode<synchronous>, transform_indices = @transform_7, window_bounds = array<i64: 1, 32>}, {pipeline_mode = #tpu.pipeline_mode<synchronous>, transform_indices = @transform_8, window_bounds = array<i64: 1, 32>}, {pipeline_mode = #tpu.pipeline_mode<synchronous>, transform_indices = @transform_9, window_bounds = array<i64: 32, 64>}, {pipeline_mode = #tpu.pipeline_mode<synchronous>, transform_indices = @transform_10, window_bounds = array<i64: 1, 64>}, {pipeline_mode = #tpu.pipeline_mode<synchronous>, transform_indices = @transform_11, window_bounds = array<i64: 64, 32>}, {pipeline_mode = #tpu.pipeline_mode<synchronous>, transform_indices = @transform_12, window_bounds = array<i64: 1, 32>}, {transform_indices = @transform_13, window_bounds = array<i64: 1, 8, 32>}]} {
    %c0 = arith.constant 0 : index
    %c0_0 = arith.constant 0 : index
    %0 = vector.load %arg2[%c0, %c0_0] : memref<1x32xf32, #tpu.memory_space<vmem>>, vector<1x32xf32>
    %c0_1 = arith.constant 0 : index
    %c0_2 = arith.constant 0 : index
    %1 = vector.load %arg3[%c0_1, %c0_2] : memref<1x32xf32, #tpu.memory_space<vmem>>, vector<1x32xf32>
    %c0_3 = arith.constant 0 : index
    %c0_4 = arith.constant 0 : index
    %2 = vector.load %arg8[%c0_3, %c0_4] : memref<1x32xf32, #tpu.memory_space<vmem>>, vector<1x32xf32>
    %c0_5 = arith.constant 0 : index
    %c0_6 = arith.constant 0 : index
    %3 = vector.load %arg9[%c0_5, %c0_6] : memref<1x32xf32, #tpu.memory_space<vmem>>, vector<1x32xf32>
    %c0_7 = arith.constant 0 : index
    %c0_8 = arith.constant 0 : index
    %4 = vector.load %arg5[%c0_7, %c0_8] : memref<1x96xf32, #tpu.memory_space<vmem>>, vector<1x96xf32>
    %c0_9 = arith.constant 0 : index
    %c0_10 = arith.constant 0 : index
    %5 = vector.load %arg7[%c0_9, %c0_10] : memref<1x32xf32, #tpu.memory_space<vmem>>, vector<1x32xf32>
    %c0_11 = arith.constant 0 : index
    %c0_12 = arith.constant 0 : index
    %6 = vector.load %arg11[%c0_11, %c0_12] : memref<1x64xf32, #tpu.memory_space<vmem>>, vector<1x64xf32>
    %c0_13 = arith.constant 0 : index
    %c0_14 = arith.constant 0 : index
    %7 = vector.load %arg13[%c0_13, %c0_14] : memref<1x32xf32, #tpu.memory_space<vmem>>, vector<1x32xf32>
    %c0_15 = arith.constant 0 : index
    %c0_16 = arith.constant 0 : index
    %c0_17 = arith.constant 0 : index
    %8 = vector.load %arg1[%c0_15, %c0_16, %c0_17] : memref<1x8x32xf32, #tpu.memory_space<vmem>>, vector<1x8x32xf32>
    %9 = vector.shape_cast %8 : vector<1x8x32xf32> to vector<8x32xf32>
    %cst = arith.constant dense<0.000000e+00> : vector<8xf32>
    %10 = vector.multi_reduction <add>, %9, %cst [1] : vector<8x32xf32> to vector<8xf32>
    %11 = vector.shape_cast %10 : vector<8xf32> to vector<8x1xf32>
    %cst_18 = arith.constant 3.200000e+01 : f32
    %12 = vector.broadcast %cst_18 : f32 to vector<8x1xf32>
    %13 = arith.divf %11, %12 : vector<8x1xf32>
    %14 = vector.broadcast %13 : vector<8x1xf32> to vector<8x32xf32>
    %15 = arith.subf %9, %14 : vector<8x32xf32>
    %16 = arith.mulf %15, %15 : vector<8x32xf32>
    %cst_19 = arith.constant dense<0.000000e+00> : vector<8xf32>
    %17 = vector.multi_reduction <add>, %16, %cst_19 [1] : vector<8x32xf32> to vector<8xf32>
    %18 = vector.shape_cast %17 : vector<8xf32> to vector<8x1xf32>
    %cst_20 = arith.constant 3.200000e+01 : f32
    %19 = vector.broadcast %cst_20 : f32 to vector<8x1xf32>
    %20 = arith.divf %18, %19 : vector<8x1xf32>
    %cst_21 = arith.constant 9.99999974E-6 : f32
    %21 = vector.broadcast %cst_21 : f32 to vector<8x1xf32>
    %22 = arith.addf %20, %21 : vector<8x1xf32>
    %23 = math.rsqrt %22 : vector<8x1xf32>
    %24 = vector.broadcast %23 : vector<8x1xf32> to vector<8x32xf32>
    %25 = arith.mulf %15, %24 : vector<8x32xf32>
    %26 = vector.broadcast %0 : vector<1x32xf32> to vector<8x32xf32>
    %27 = arith.mulf %25, %26 : vector<8x32xf32>
    %28 = vector.broadcast %1 : vector<1x32xf32> to vector<8x32xf32>
    %29 = arith.addf %27, %28 : vector<8x32xf32>
    %c0_22 = arith.constant 0 : index
    %c0_23 = arith.constant 0 : index
    %30 = vector.load %arg4[%c0_22, %c0_23] : memref<32x96xf32, #tpu.memory_space<vmem>>, vector<32x96xf32>
    %cst_24 = arith.constant dense<0.000000e+00> : vector<8x96xf32>
    %31 = tpu.matmul %29, %30, %cst_24 {dimension_numbers = #tpu.dot_dimension_numbers<[1], [0], [0], [1], [0, 0, 1, 1], [], []>} : vector<8x32xf32>, vector<32x96xf32>, vector<8x96xf32> -> vector<8x96xf32>
    %32 = vector.broadcast %4 : vector<1x96xf32> to vector<8x96xf32>
    %33 = arith.addf %31, %32 : vector<8x96xf32>
    %34 = vector.extract_strided_slice %33 {offsets = [0, 0], sizes = [8, 32], strides = [1, 1]} : vector<8x96xf32> to vector<8x32xf32>
    %35 = vector.extract_strided_slice %33 {offsets = [0, 32], sizes = [8, 32], strides = [1, 1]} : vector<8x96xf32> to vector<8x32xf32>
    %36 = vector.extract_strided_slice %33 {offsets = [0, 64], sizes = [8, 32], strides = [1, 1]} : vector<8x96xf32> to vector<8x32xf32>
    %37 = vector.extract_strided_slice %34 {offsets = [0, 0], sizes = [8, 16], strides = [1, 1]} : vector<8x32xf32> to vector<8x16xf32>
    %38 = vector.shape_cast %37 : vector<8x16xf32> to vector<1x8x16xf32>
    %39 = vector.extract_strided_slice %35 {offsets = [0, 0], sizes = [8, 16], strides = [1, 1]} : vector<8x32xf32> to vector<8x16xf32>
    %40 = vector.shape_cast %39 : vector<8x16xf32> to vector<1x8x16xf32>
    %41 = vector.extract_strided_slice %36 {offsets = [0, 0], sizes = [8, 16], strides = [1, 1]} : vector<8x32xf32> to vector<8x16xf32>
    %42 = vector.shape_cast %41 : vector<8x16xf32> to vector<1x8x16xf32>
    "tpu.trace_start"() <{level = 10 : i32, message = "btd,bsd->bts"}> : () -> ()
    %cst_25 = arith.constant dense<0.000000e+00> : vector<1x8x8xf32>
    %43 = tpu.matmul %38, %40, %cst_25 {dimension_numbers = #tpu.dot_dimension_numbers<[2], [2], [1], [1], [0, 0, 0, 1, 1, 1], [0], [0]>} : vector<1x8x16xf32>, vector<1x8x16xf32>, vector<1x8x8xf32> -> vector<1x8x8xf32>
    "tpu.trace_stop"() : () -> ()
    %cst_26 = arith.constant dense<0xFF800000> : vector<1x8xf32>
    %44 = vector.multi_reduction <maximumf>, %43, %cst_26 [2] : vector<1x8x8xf32> to vector<1x8xf32>
    %45 = vector.shape_cast %44 : vector<1x8xf32> to vector<1x8x1xf32>
    %46 = vector.broadcast %45 : vector<1x8x1xf32> to vector<1x8x8xf32>
    %47 = arith.subf %43, %46 : vector<1x8x8xf32>
    %48 = math.exp %47 : vector<1x8x8xf32>
    %cst_27 = arith.constant dense<0.000000e+00> : vector<1x8xf32>
    %49 = vector.multi_reduction <add>, %48, %cst_27 [2] : vector<1x8x8xf32> to vector<1x8xf32>
    %50 = vector.shape_cast %49 : vector<1x8xf32> to vector<1x8x1xf32>
    %51 = tpu.reciprocal %50 {approx = true} : vector<1x8x1xf32> -> vector<1x8x1xf32>
    %52 = arith.mulf %50, %51 : vector<1x8x1xf32>
    %cst_28 = arith.constant 2.000000e+00 : f32
    %53 = vector.broadcast %cst_28 : f32 to vector<1x8x1xf32>
    %54 = arith.subf %53, %52 : vector<1x8x1xf32>
    %55 = arith.mulf %51, %54 : vector<1x8x1xf32>
    %56 = vector.broadcast %55 : vector<1x8x1xf32> to vector<1x8x8xf32>
    %57 = arith.mulf %48, %56 : vector<1x8x8xf32>
    "tpu.trace_start"() <{level = 10 : i32, message = "bts,bsd->btd"}> : () -> ()
    %cst_29 = arith.constant dense<0.000000e+00> : vector<1x8x16xf32>
    %58 = tpu.matmul %57, %42, %cst_29 {dimension_numbers = #tpu.dot_dimension_numbers<[2], [1], [1], [2], [0, 0, 0, 1, 1, 2], [0], [0]>} : vector<1x8x8xf32>, vector<1x8x16xf32>, vector<1x8x16xf32> -> vector<1x8x16xf32>
    "tpu.trace_stop"() : () -> ()
    %59 = vector.shape_cast %58 : vector<1x8x16xf32> to vector<8x16xf32>
    %c0_30 = arith.constant 0 : index
    %c0_31 = arith.constant 0 : index
    %60 = vector.load %arg15[%c0_30, %c0_31] : memref<8x32xf32, #tpu.memory_space<vmem>>, vector<8x16xf32>
    tpu.vector_store %arg15[%c0_30, %c0_31], %59 {strides = array<i32>} : memref<8x32xf32, #tpu.memory_space<vmem>>, vector<8x16xf32>,
    %61 = vector.extract_strided_slice %34 {offsets = [0, 16], sizes = [8, 16], strides = [1, 1]} : vector<8x32xf32> to vector<8x16xf32>
    %62 = vector.shape_cast %61 : vector<8x16xf32> to vector<1x8x16xf32>
    %63 = vector.extract_strided_slice %35 {offsets = [0, 16], sizes = [8, 16], strides = [1, 1]} : vector<8x32xf32> to vector<8x16xf32>
    %64 = vector.shape_cast %63 : vector<8x16xf32> to vector<1x8x16xf32>
    %65 = vector.extract_strided_slice %36 {offsets = [0, 16], sizes = [8, 16], strides = [1, 1]} : vector<8x32xf32> to vector<8x16xf32>
    %66 = vector.shape_cast %65 : vector<8x16xf32> to vector<1x8x16xf32>
    "tpu.trace_start"() <{level = 10 : i32, message = "btd,bsd->bts"}> : () -> ()
    %cst_32 = arith.constant dense<0.000000e+00> : vector<1x8x8xf32>
    %67 = tpu.matmul %62, %64, %cst_32 {dimension_numbers = #tpu.dot_dimension_numbers<[2], [2], [1], [1], [0, 0, 0, 1, 1, 1], [0], [0]>} : vector<1x8x16xf32>, vector<1x8x16xf32>, vector<1x8x8xf32> -> vector<1x8x8xf32>
    "tpu.trace_stop"() : () -> ()
    %cst_33 = arith.constant dense<0xFF800000> : vector<1x8xf32>
    %68 = vector.multi_reduction <maximumf>, %67, %cst_33 [2] : vector<1x8x8xf32> to vector<1x8xf32>
    %69 = vector.shape_cast %68 : vector<1x8xf32> to vector<1x8x1xf32>
    %70 = vector.broadcast %69 : vector<1x8x1xf32> to vector<1x8x8xf32>
    %71 = arith.subf %67, %70 : vector<1x8x8xf32>
    %72 = math.exp %71 : vector<1x8x8xf32>
    %cst_34 = arith.constant dense<0.000000e+00> : vector<1x8xf32>
    %73 = vector.multi_reduction <add>, %72, %cst_34 [2] : vector<1x8x8xf32> to vector<1x8xf32>
    %74 = vector.shape_cast %73 : vector<1x8xf32> to vector<1x8x1xf32>
    %75 = tpu.reciprocal %74 {approx = true} : vector<1x8x1xf32> -> vector<1x8x1xf32>
    %76 = arith.mulf %74, %75 : vector<1x8x1xf32>
    %cst_35 = arith.constant 2.000000e+00 : f32
    %77 = vector.broadcast %cst_35 : f32 to vector<1x8x1xf32>
    %78 = arith.subf %77, %76 : vector<1x8x1xf32>
    %79 = arith.mulf %75, %78 : vector<1x8x1xf32>
    %80 = vector.broadcast %79 : vector<1x8x1xf32> to vector<1x8x8xf32>
    %81 = arith.mulf %72, %80 : vector<1x8x8xf32>
    "tpu.trace_start"() <{level = 10 : i32, message = "bts,bsd->btd"}> : () -> ()
    %cst_36 = arith.constant dense<0.000000e+00> : vector<1x8x16xf32>
    %82 = tpu.matmul %81, %66, %cst_36 {dimension_numbers = #tpu.dot_dimension_numbers<[2], [1], [1], [2], [0, 0, 0, 1, 1, 2], [0], [0]>} : vector<1x8x8xf32>, vector<1x8x16xf32>, vector<1x8x16xf32> -> vector<1x8x16xf32>
    "tpu.trace_stop"() : () -> ()
    %83 = vector.shape_cast %82 : vector<1x8x16xf32> to vector<8x16xf32>
    %c0_37 = arith.constant 0 : index
    %c16 = arith.constant 16 : index
    %84 = vector.load %arg15[%c0_37, %c16] : memref<8x32xf32, #tpu.memory_space<vmem>>, vector<8x16xf32>
    tpu.vector_store %arg15[%c0_37, %c16], %83 {strides = array<i32>} : memref<8x32xf32, #tpu.memory_space<vmem>>, vector<8x16xf32>,
    %c0_38 = arith.constant 0 : index
    %c0_39 = arith.constant 0 : index
    %85 = vector.load %arg15[%c0_38, %c0_39] : memref<8x32xf32, #tpu.memory_space<vmem>>, vector<8x32xf32>
    %c0_40 = arith.constant 0 : index
    %c0_41 = arith.constant 0 : index
    %86 = vector.load %arg6[%c0_40, %c0_41] : memref<32x32xf32, #tpu.memory_space<vmem>>, vector<32x32xf32>
    %cst_42 = arith.constant dense<0.000000e+00> : vector<8x32xf32>
    %87 = tpu.matmul %85, %86, %cst_42 {dimension_numbers = #tpu.dot_dimension_numbers<[1], [0], [0], [1], [0, 0, 1, 1], [], []>} : vector<8x32xf32>, vector<32x32xf32>, vector<8x32xf32> -> vector<8x32xf32>
    %88 = vector.broadcast %5 : vector<1x32xf32> to vector<8x32xf32>
    %89 = arith.addf %87, %88 : vector<8x32xf32>
    %90 = arith.addf %9, %89 : vector<8x32xf32>
    %cst_43 = arith.constant dense<0.000000e+00> : vector<8xf32>
    %91 = vector.multi_reduction <add>, %90, %cst_43 [1] : vector<8x32xf32> to vector<8xf32>
    %92 = vector.shape_cast %91 : vector<8xf32> to vector<8x1xf32>
    %cst_44 = arith.constant 3.200000e+01 : f32
    %93 = vector.broadcast %cst_44 : f32 to vector<8x1xf32>
    %94 = arith.divf %92, %93 : vector<8x1xf32>
    %95 = vector.broadcast %94 : vector<8x1xf32> to vector<8x32xf32>
    %96 = arith.subf %90, %95 : vector<8x32xf32>
    %97 = arith.mulf %96, %96 : vector<8x32xf32>
    %cst_45 = arith.constant dense<0.000000e+00> : vector<8xf32>
    %98 = vector.multi_reduction <add>, %97, %cst_45 [1] : vector<8x32xf32> to vector<8xf32>
    %99 = vector.shape_cast %98 : vector<8xf32> to vector<8x1xf32>
    %cst_46 = arith.constant 3.200000e+01 : f32
    %100 = vector.broadcast %cst_46 : f32 to vector<8x1xf32>
    %101 = arith.divf %99, %100 : vector<8x1xf32>
    %cst_47 = arith.constant 9.99999974E-6 : f32
    %102 = vector.broadcast %cst_47 : f32 to vector<8x1xf32>
    %103 = arith.addf %101, %102 : vector<8x1xf32>
    %104 = math.rsqrt %103 : vector<8x1xf32>
    %105 = vector.broadcast %104 : vector<8x1xf32> to vector<8x32xf32>
    %106 = arith.mulf %96, %105 : vector<8x32xf32>
    %107 = vector.broadcast %2 : vector<1x32xf32> to vector<8x32xf32>
    %108 = arith.mulf %106, %107 : vector<8x32xf32>
    %109 = vector.broadcast %3 : vector<1x32xf32> to vector<8x32xf32>
    %110 = arith.addf %108, %109 : vector<8x32xf32>
    %c0_48 = arith.constant 0 : index
    %c0_49 = arith.constant 0 : index
    %111 = vector.load %arg10[%c0_48, %c0_49] : memref<32x64xf32, #tpu.memory_space<vmem>>, vector<32x64xf32>
    %cst_50 = arith.constant dense<0.000000e+00> : vector<8x64xf32>
    %112 = tpu.matmul %110, %111, %cst_50 {dimension_numbers = #tpu.dot_dimension_numbers<[1], [0], [0], [1], [0, 0, 1, 1], [], []>} : vector<8x32xf32>, vector<32x64xf32>, vector<8x64xf32> -> vector<8x64xf32>
    %113 = vector.broadcast %6 : vector<1x64xf32> to vector<8x64xf32>
    %114 = arith.addf %112, %113 : vector<8x64xf32>
    %cst_51 = arith.constant 0.000000e+00 : f32
    %115 = vector.broadcast %cst_51 : f32 to vector<8x64xf32>
    %116 = arith.maximumf %114, %115 : vector<8x64xf32>
    %c0_52 = arith.constant 0 : index
    %c0_53 = arith.constant 0 : index
    %117 = vector.load %arg12[%c0_52, %c0_53] : memref<64x32xf32, #tpu.memory_space<vmem>>, vector<64x32xf32>
    %cst_54 = arith.constant dense<0.000000e+00> : vector<8x32xf32>
    %118 = tpu.matmul %116, %117, %cst_54 {dimension_numbers = #tpu.dot_dimension_numbers<[1], [0], [0], [1], [0, 0, 1, 1], [], []>} : vector<8x64xf32>, vector<64x32xf32>, vector<8x32xf32> -> vector<8x32xf32>
    %119 = vector.broadcast %7 : vector<1x32xf32> to vector<8x32xf32>
    %120 = arith.addf %118, %119 : vector<8x32xf32>
    %121 = arith.addf %90, %120 : vector<8x32xf32>
    %122 = vector.shape_cast %121 : vector<8x32xf32> to vector<1x8x32xf32>
    %c0_55 = arith.constant 0 : index
    %c0_56 = arith.constant 0 : index
    %c0_57 = arith.constant 0 : index
    %123 = vector.load %arg14[%c0_55, %c0_56, %c0_57] : memref<1x8x32xf32, #tpu.memory_space<vmem>>, vector<1x8x32xf32>
    tpu.vector_store %arg14[%c0_55, %c0_56, %c0_57], %122 {strides = array<i32>} : memref<1x8x32xf32, #tpu.memory_space<vmem>>, vector<1x8x32xf32>,
    return
  }
  func.func @transform_0(%arg0: i32) -> (i32, i32, i32) {
    %c0_i32 = arith.constant 0 : i32
    %c0_i32_0 = arith.constant 0 : i32
    %c0_i32_1 = arith.constant 0 : i32
    return %arg0, %c0_i32, %c0_i32_0 : i32, i32, i32
  }
  func.func @transform_1(%arg0: i32) -> (i32, i32) {
    %c0_i32 = arith.constant 0 : i32
    %c0_i32_0 = arith.constant 0 : i32
    %c0_i32_1 = arith.constant 0 : i32
    return %c0_i32, %c0_i32_0 : i32, i32
  }
  func.func @transform_2(%arg0: i32) -> (i32, i32) {
    %c0_i32 = arith.constant 0 : i32
    %c0_i32_0 = arith.constant 0 : i32
    %c0_i32_1 = arith.constant 0 : i32
    return %c0_i32, %c0_i32_0 : i32, i32
  }
  func.func @transform_3(%arg0: i32) -> (i32, i32) {
    %c0_i32 = arith.constant 0 : i32
    %c0_i32_0 = arith.constant 0 : i32
    %c0_i32_1 = arith.constant 0 : i32
    return %c0_i32, %c0_i32_0 : i32, i32
  }
  func.func @transform_4(%arg0: i32) -> (i32, i32) {
    %c0_i32 = arith.constant 0 : i32
    %c0_i32_0 = arith.constant 0 : i32
    %c0_i32_1 = arith.constant 0 : i32
    return %c0_i32, %c0_i32_0 : i32, i32
  }
  func.func @transform_5(%arg0: i32) -> (i32, i32) {
    %c0_i32 = arith.constant 0 : i32
    %c0_i32_0 = arith.constant 0 : i32
    %c0_i32_1 = arith.constant 0 : i32
    return %c0_i32, %c0_i32_0 : i32, i32
  }
  func.func @transform_6(%arg0: i32) -> (i32, i32) {
    %c0_i32 = arith.constant 0 : i32
    %c0_i32_0 = arith.constant 0 : i32
    %c0_i32_1 = arith.constant 0 : i32
    return %c0_i32, %c0_i32_0 : i32, i32
  }
  func.func @transform_7(%arg0: i32) -> (i32, i32) {
    %c0_i32 = arith.constant 0 : i32
    %c0_i32_0 = arith.constant 0 : i32
    %c0_i32_1 = arith.constant 0 : i32
    return %c0_i32, %c0_i32_0 : i32, i32
  }
  func.func @transform_8(%arg0: i32) -> (i32, i32) {
    %c0_i32 = arith.constant 0 : i32
    %c0_i32_0 = arith.constant 0 : i32
    %c0_i32_1 = arith.constant 0 : i32
    return %c0_i32, %c0_i32_0 : i32, i32
  }
  func.func @transform_9(%arg0: i32) -> (i32, i32) {
    %c0_i32 = arith.constant 0 : i32
    %c0_i32_0 = arith.constant 0 : i32
    %c0_i32_1 = arith.constant 0 : i32
    return %c0_i32, %c0_i32_0 : i32, i32
  }
  func.func @transform_10(%arg0: i32) -> (i32, i32) {
    %c0_i32 = arith.constant 0 : i32
    %c0_i32_0 = arith.constant 0 : i32
    %c0_i32_1 = arith.constant 0 : i32
    return %c0_i32, %c0_i32_0 : i32, i32
  }
  func.func @transform_11(%arg0: i32) -> (i32, i32) {
    %c0_i32 = arith.constant 0 : i32
    %c0_i32_0 = arith.constant 0 : i32
    %c0_i32_1 = arith.constant 0 : i32
    return %c0_i32, %c0_i32_0 : i32, i32
  }
  func.func @transform_12(%arg0: i32) -> (i32, i32) {
    %c0_i32 = arith.constant 0 : i32
    %c0_i32_0 = arith.constant 0 : i32
    %c0_i32_1 = arith.constant 0 : i32
    return %c0_i32, %c0_i32_0 : i32, i32
  }
  func.func @transform_13(%arg0: i32) -> (i32, i32, i32) {
    %c0_i32 = arith.constant 0 : i32
    %c0_i32_0 = arith.constant 0 : i32
    %c0_i32_1 = arith.constant 0 : i32
    return %arg0, %c0_i32, %c0_i32_0 : i32, i32, i32
  }
}

module attributes {stable_mosaic.version = 11 : i64} {
  func.func @kernel(%arg0: i32, %arg1: memref<1x8x32xf32, #tpu.memory_space<vmem>>, %arg2: memref<1x32xf32, #tpu.memory_space<vmem>>, %arg3: memref<1x32xf32, #tpu.memory_space<vmem>>, %arg4: memref<32x96xf32, #tpu.memory_space<vmem>>, %arg5: memref<1x96xf32, #tpu.memory_space<vmem>>, %arg6: memref<32x32xf32, #tpu.memory_space<vmem>>, %arg7: memref<1x32xf32, #tpu.memory_space<vmem>>, %arg8: memref<1x32xf32, #tpu.memory_space<vmem>>, %arg9: memref<1x32xf32, #tpu.memory_space<vmem>>, %arg10: memref<32x64xf32, #tpu.memory_space<vmem>>, %arg11: memref<1x64xf32, #tpu.memory_space<vmem>>, %arg12: memref<64x32xf32, #tpu.memory_space<vmem>>, %arg13: memref<1x32xf32, #tpu.memory_space<vmem>>, %arg14: memref<1x8x32xf32, #tpu.memory_space<vmem>>, %arg15: memref<8x32xf32, #tpu.memory_space<vmem>>) attributes {dimension_semantics = [#tpu.dimension_semantics<parallel>], iteration_bounds = array<i64: 2>, scalar_prefetch = 0 : i64, scratch_operands = 1 : i64, tpu.core_type = #tpu.core_type<tc>, window_params = [{transform_indices = @transform_0, window_bounds = array<i64: 1, 8, 32>}, {pipeline_mode = #tpu.pipeline_mode<synchronous>, transform_indices = @transform_1, window_bounds = array<i64: 1, 32>}, {pipeline_mode = #tpu.pipeline_mode<synchronous>, transform_indices = @transform_2, window_bounds = array<i64: 1, 32>}, {pipeline_mode = #tpu.pipeline_mode<synchronous>, transform_indices = @transform_3, window_bounds = array<i64: 32, 96>}, {pipeline_mode = #tpu.pipeline_mode<synchronous>, transform_indices = @transform_4, window_bounds = array<i64: 1, 96>}, {pipeline_mode = #tpu.pipeline_mode<synchronous>, transform_indices = @transform_5, window_bounds = array<i64: 32, 32>}, {pipeline_mode = #tpu.pipeline_mode<synchronous>, transform_indices = @transform_6, window_bounds = array<i64: 1, 32>}, {pipeline_mode = #tpu.pipeline_mode<synchronous>, transform_indices = @transform_7, window_bounds = array<i64: 1, 32>}, {pipeline_mode = #tpu.pipeline_mode<synchronous>, transform_indices = @transform_8, window_bounds = array<i64: 1, 32>}, {pipeline_mode = #tpu.pipeline_mode<synchronous>, transform_indices = @transform_9, window_bounds = array<i64: 32, 64>}, {pipeline_mode = #tpu.pipeline_mode<synchronous>, transform_indices = @transform_10, window_bounds = array<i64: 1, 64>}, {pipeline_mode = #tpu.pipeline_mode<synchronous>, transform_indices = @transform_11, window_bounds = array<i64: 64, 32>}, {pipeline_mode = #tpu.pipeline_mode<synchronous>, transform_indices = @transform_12, window_bounds = array<i64: 1, 32>}, {transform_indices = @transform_13, window_bounds = array<i64: 1, 8, 32>}]} {
    %c0 = arith.constant 0 : index
    %c0_0 = arith.constant 0 : index
    %0 = vector.load %arg2[%c0, %c0_0] : memref<1x32xf32, #tpu.memory_space<vmem>>, vector<1x32xf32>
    %c0_1 = arith.constant 0 : index
    %c0_2 = arith.constant 0 : index
    %1 = vector.load %arg3[%c0_1, %c0_2] : memref<1x32xf32, #tpu.memory_space<vmem>>, vector<1x32xf32>
    %c0_3 = arith.constant 0 : index
    %c0_4 = arith.constant 0 : index
    %2 = vector.load %arg8[%c0_3, %c0_4] : memref<1x32xf32, #tpu.memory_space<vmem>>, vector<1x32xf32>
    %c0_5 = arith.constant 0 : index
    %c0_6 = arith.constant 0 : index
    %3 = vector.load %arg9[%c0_5, %c0_6] : memref<1x32xf32, #tpu.memory_space<vmem>>, vector<1x32xf32>
    %c0_7 = arith.constant 0 : index
    %c0_8 = arith.constant 0 : index
    %4 = vector.load %arg5[%c0_7, %c0_8] : memref<1x96xf32, #tpu.memory_space<vmem>>, vector<1x96xf32>
    %c0_9 = arith.constant 0 : index
    %c0_10 = arith.constant 0 : index
    %5 = vector.load %arg7[%c0_9, %c0_10] : memref<1x32xf32, #tpu.memory_space<vmem>>, vector<1x32xf32>
    %c0_11 = arith.constant 0 : index
    %c0_12 = arith.constant 0 : index
    %6 = vector.load %arg11[%c0_11, %c0_12] : memref<1x64xf32, #tpu.memory_space<vmem>>, vector<1x64xf32>
    %c0_13 = arith.constant 0 : index
    %c0_14 = arith.constant 0 : index
    %7 = vector.load %arg13[%c0_13, %c0_14] : memref<1x32xf32, #tpu.memory_space<vmem>>, vector<1x32xf32>
    %c0_15 = arith.constant 0 : index
    %c0_16 = arith.constant 0 : index
    %c0_17 = arith.constant 0 : index
    %8 = vector.load %arg1[%c0_15, %c0_16, %c0_17] : memref<1x8x32xf32, #tpu.memory_space<vmem>>, vector<1x8x32xf32>
    %9 = vector.shape_cast %8 : vector<1x8x32xf32> to vector<8x32xf32>
    %cst = arith.constant dense<0.000000e+00> : vector<8xf32>
    %10 = vector.multi_reduction <add>, %9, %cst [1] : vector<8x32xf32> to vector<8xf32>
    %11 = vector.shape_cast %10 : vector<8xf32> to vector<8x1xf32>
    %cst_18 = arith.constant 3.200000e+01 : f32
    %12 = vector.broadcast %cst_18 : f32 to vector<8x1xf32>
    %13 = arith.divf %11, %12 : vector<8x1xf32>
    %14 = vector.broadcast %13 : vector<8x1xf32> to vector<8x32xf32>
    %15 = arith.subf %9, %14 : vector<8x32xf32>
    %16 = arith.mulf %15, %15 : vector<8x32xf32>
    %cst_19 = arith.constant dense<0.000000e+00> : vector<8xf32>
    %17 = vector.multi_reduction <add>, %16, %cst_19 [1] : vector<8x32xf32> to vector<8xf32>
    %18 = vector.shape_cast %17 : vector<8xf32> to vector<8x1xf32>
    %cst_20 = arith.constant 3.200000e+01 : f32
    %19 = vector.broadcast %cst_20 : f32 to vector<8x1xf32>
    %20 = arith.divf %18, %19 : vector<8x1xf32>
    %cst_21 = arith.constant 9.99999974E-6 : f32
    %21 = vector.broadcast %cst_21 : f32 to vector<8x1xf32>
    %22 = arith.addf %20, %21 : vector<8x1xf32>
    %23 = math.rsqrt %22 : vector<8x1xf32>
    %24 = vector.broadcast %23 : vector<8x1xf32> to vector<8x32xf32>
    %25 = arith.mulf %15, %24 : vector<8x32xf32>
    %26 = vector.broadcast %0 : vector<1x32xf32> to vector<8x32xf32>
    %27 = arith.mulf %25, %26 : vector<8x32xf32>
    %28 = vector.broadcast %1 : vector<1x32xf32> to vector<8x32xf32>
    %29 = arith.addf %27, %28 : vector<8x32xf32>
    %c0_22 = arith.constant 0 : index
    %c0_23 = arith.constant 0 : index
    %30 = vector.load %arg4[%c0_22, %c0_23] : memref<32x96xf32, #tpu.memory_space<vmem>>, vector<32x96xf32>
    %cst_24 = arith.constant dense<0.000000e+00> : vector<8x96xf32>
    %31 = tpu.matmul %29, %30, %cst_24 {dimension_numbers = #tpu.dot_dimension_numbers<[1], [0], [0], [1], [0, 0, 1, 1], [], []>} : vector<8x32xf32>, vector<32x96xf32>, vector<8x96xf32> -> vector<8x96xf32>
    %32 = vector.broadcast %4 : vector<1x96xf32> to vector<8x96xf32>
    %33 = arith.addf %31, %32 : vector<8x96xf32>
    %34 = vector.extract_strided_slice %33 {offsets = [0, 0], sizes = [8, 32], strides = [1, 1]} : vector<8x96xf32> to vector<8x32xf32>
    %35 = vector.extract_strided_slice %33 {offsets = [0, 32], sizes = [8, 32], strides = [1, 1]} : vector<8x96xf32> to vector<8x32xf32>
    %36 = vector.extract_strided_slice %33 {offsets = [0, 64], sizes = [8, 32], strides = [1, 1]} : vector<8x96xf32> to vector<8x32xf32>
    %37 = vector.extract_strided_slice %34 {offsets = [0, 0], sizes = [8, 16], strides = [1, 1]} : vector<8x32xf32> to vector<8x16xf32>
    %38 = vector.shape_cast %37 : vector<8x16xf32> to vector<1x8x16xf32>
    %39 = vector.extract_strided_slice %35 {offsets = [0, 0], sizes = [8, 16], strides = [1, 1]} : vector<8x32xf32> to vector<8x16xf32>
    %40 = vector.shape_cast %39 : vector<8x16xf32> to vector<1x8x16xf32>
    %41 = vector.extract_strided_slice %36 {offsets = [0, 0], sizes = [8, 16], strides = [1, 1]} : vector<8x32xf32> to vector<8x16xf32>
    %42 = vector.shape_cast %41 : vector<8x16xf32> to vector<1x8x16xf32>
    "tpu.trace_start"() <{level = 10 : i32, message = "btd,bsd->bts"}> : () -> ()
    %cst_25 = arith.constant dense<0.000000e+00> : vector<1x8x8xf32>
    %43 = tpu.matmul %38, %40, %cst_25 {dimension_numbers = #tpu.dot_dimension_numbers<[2], [2], [1], [1], [0, 0, 0, 1, 1, 1], [0], [0]>} : vector<1x8x16xf32>, vector<1x8x16xf32>, vector<1x8x8xf32> -> vector<1x8x8xf32>
    "tpu.trace_stop"() : () -> ()
    %cst_26 = arith.constant dense<0xFF800000> : vector<1x8xf32>
    %44 = vector.multi_reduction <maximumf>, %43, %cst_26 [2] : vector<1x8x8xf32> to vector<1x8xf32>
    %45 = vector.shape_cast %44 : vector<1x8xf32> to vector<1x8x1xf32>
    %46 = vector.broadcast %45 : vector<1x8x1xf32> to vector<1x8x8xf32>
    %47 = arith.subf %43, %46 : vector<1x8x8xf32>
    %48 = math.exp %47 : vector<1x8x8xf32>
    %cst_27 = arith.constant dense<0.000000e+00> : vector<1x8xf32>
    %49 = vector.multi_reduction <add>, %48, %cst_27 [2] : vector<1x8x8xf32> to vector<1x8xf32>
    %50 = vector.shape_cast %49 : vector<1x8xf32> to vector<1x8x1xf32>
    %51 = tpu.reciprocal %50 {approx = true} : vector<1x8x1xf32> -> vector<1x8x1xf32>
    %52 = arith.mulf %50, %51 : vector<1x8x1xf32>
    %cst_28 = arith.constant 2.000000e+00 : f32
    %53 = vector.broadcast %cst_28 : f32 to vector<1x8x1xf32>
    %54 = arith.subf %53, %52 : vector<1x8x1xf32>
    %55 = arith.mulf %51, %54 : vector<1x8x1xf32>
    %56 = vector.broadcast %55 : vector<1x8x1xf32> to vector<1x8x8xf32>
    %57 = arith.mulf %48, %56 : vector<1x8x8xf32>
    "tpu.trace_start"() <{level = 10 : i32, message = "bts,bsd->btd"}> : () -> ()
    %cst_29 = arith.constant dense<0.000000e+00> : vector<1x8x16xf32>
    %58 = tpu.matmul %57, %42, %cst_29 {dimension_numbers = #tpu.dot_dimension_numbers<[2], [1], [1], [2], [0, 0, 0, 1, 1, 2], [0], [0]>} : vector<1x8x8xf32>, vector<1x8x16xf32>, vector<1x8x16xf32> -> vector<1x8x16xf32>
    "tpu.trace_stop"() : () -> ()
    %59 = vector.shape_cast %58 : vector<1x8x16xf32> to vector<8x16xf32>
    %c0_30 = arith.constant 0 : index
    %c0_31 = arith.constant 0 : index
    %60 = vector.load %arg15[%c0_30, %c0_31] : memref<8x32xf32, #tpu.memory_space<vmem>>, vector<8x16xf32>
    tpu.vector_store %arg15[%c0_30, %c0_31], %59 {strides = array<i32>} : memref<8x32xf32, #tpu.memory_space<vmem>>, vector<8x16xf32>,
    %61 = vector.extract_strided_slice %34 {offsets = [0, 16], sizes = [8, 16], strides = [1, 1]} : vector<8x32xf32> to vector<8x16xf32>
    %62 = vector.shape_cast %61 : vector<8x16xf32> to vector<1x8x16xf32>
    %63 = vector.extract_strided_slice %35 {offsets = [0, 16], sizes = [8, 16], strides = [1, 1]} : vector<8x32xf32> to vector<8x16xf32>
    %64 = vector.shape_cast %63 : vector<8x16xf32> to vector<1x8x16xf32>
    %65 = vector.extract_strided_slice %36 {offsets = [0, 16], sizes = [8, 16], strides = [1, 1]} : vector<8x32xf32> to vector<8x16xf32>
    %66 = vector.shape_cast %65 : vector<8x16xf32> to vector<1x8x16xf32>
    "tpu.trace_start"() <{level = 10 : i32, message = "btd,bsd->bts"}> : () -> ()
    %cst_32 = arith.constant dense<0.000000e+00> : vector<1x8x8xf32>
    %67 = tpu.matmul %62, %64, %cst_32 {dimension_numbers = #tpu.dot_dimension_numbers<[2], [2], [1], [1], [0, 0, 0, 1, 1, 1], [0], [0]>} : vector<1x8x16xf32>, vector<1x8x16xf32>, vector<1x8x8xf32> -> vector<1x8x8xf32>
    "tpu.trace_stop"() : () -> ()
    %cst_33 = arith.constant dense<0xFF800000> : vector<1x8xf32>
    %68 = vector.multi_reduction <maximumf>, %67, %cst_33 [2] : vector<1x8x8xf32> to vector<1x8xf32>
    %69 = vector.shape_cast %68 : vector<1x8xf32> to vector<1x8x1xf32>
    %70 = vector.broadcast %69 : vector<1x8x1xf32> to vector<1x8x8xf32>
    %71 = arith.subf %67, %70 : vector<1x8x8xf32>
    %72 = math.exp %71 : vector<1x8x8xf32>
    %cst_34 = arith.constant dense<0.000000e+00> : vector<1x8xf32>
    %73 = vector.multi_reduction <add>, %72, %cst_34 [2] : vector<1x8x8xf32> to vector<1x8xf32>
    %74 = vector.shape_cast %73 : vector<1x8xf32> to vector<1x8x1xf32>
    %75 = tpu.reciprocal %74 {approx = true} : vector<1x8x1xf32> -> vector<1x8x1xf32>
    %76 = arith.mulf %74, %75 : vector<1x8x1xf32>
    %cst_35 = arith.constant 2.000000e+00 : f32
    %77 = vector.broadcast %cst_35 : f32 to vector<1x8x1xf32>
    %78 = arith.subf %77, %76 : vector<1x8x1xf32>
    %79 = arith.mulf %75, %78 : vector<1x8x1xf32>
    %80 = vector.broadcast %79 : vector<1x8x1xf32> to vector<1x8x8xf32>
    %81 = arith.mulf %72, %80 : vector<1x8x8xf32>
    "tpu.trace_start"() <{level = 10 : i32, message = "bts,bsd->btd"}> : () -> ()
    %cst_36 = arith.constant dense<0.000000e+00> : vector<1x8x16xf32>
    %82 = tpu.matmul %81, %66, %cst_36 {dimension_numbers = #tpu.dot_dimension_numbers<[2], [1], [1], [2], [0, 0, 0, 1, 1, 2], [0], [0]>} : vector<1x8x8xf32>, vector<1x8x16xf32>, vector<1x8x16xf32> -> vector<1x8x16xf32>
    "tpu.trace_stop"() : () -> ()
    %83 = vector.shape_cast %82 : vector<1x8x16xf32> to vector<8x16xf32>
    %c0_37 = arith.constant 0 : index
    %c16 = arith.constant 16 : index
    %84 = vector.load %arg15[%c0_37, %c16] : memref<8x32xf32, #tpu.memory_space<vmem>>, vector<8x16xf32>
    tpu.vector_store %arg15[%c0_37, %c16], %83 {strides = array<i32>} : memref<8x32xf32, #tpu.memory_space<vmem>>, vector<8x16xf32>,
    %c0_38 = arith.constant 0 : index
    %c0_39 = arith.constant 0 : index
    %85 = vector.load %arg15[%c0_38, %c0_39] : memref<8x32xf32, #tpu.memory_space<vmem>>, vector<8x32xf32>
    %c0_40 = arith.constant 0 : index
    %c0_41 = arith.constant 0 : index
    %86 = vector.load %arg6[%c0_40, %c0_41] : memref<32x32xf32, #tpu.memory_space<vmem>>, vector<32x32xf32>
    %cst_42 = arith.constant dense<0.000000e+00> : vector<8x32xf32>
    %87 = tpu.matmul %85, %86, %cst_42 {dimension_numbers = #tpu.dot_dimension_numbers<[1], [0], [0], [1], [0, 0, 1, 1], [], []>} : vector<8x32xf32>, vector<32x32xf32>, vector<8x32xf32> -> vector<8x32xf32>
    %88 = vector.broadcast %5 : vector<1x32xf32> to vector<8x32xf32>
    %89 = arith.addf %87, %88 : vector<8x32xf32>
    %90 = arith.addf %9, %89 : vector<8x32xf32>
    %cst_43 = arith.constant dense<0.000000e+00> : vector<8xf32>
    %91 = vector.multi_reduction <add>, %90, %cst_43 [1] : vector<8x32xf32> to vector<8xf32>
    %92 = vector.shape_cast %91 : vector<8xf32> to vector<8x1xf32>
    %cst_44 = arith.constant 3.200000e+01 : f32
    %93 = vector.broadcast %cst_44 : f32 to vector<8x1xf32>
    %94 = arith.divf %92, %93 : vector<8x1xf32>
    %95 = vector.broadcast %94 : vector<8x1xf32> to vector<8x32xf32>
    %96 = arith.subf %90, %95 : vector<8x32xf32>
    %97 = arith.mulf %96, %96 : vector<8x32xf32>
    %cst_45 = arith.constant dense<0.000000e+00> : vector<8xf32>
    %98 = vector.multi_reduction <add>, %97, %cst_45 [1] : vector<8x32xf32> to vector<8xf32>
    %99 = vector.shape_cast %98 : vector<8xf32> to vector<8x1xf32>
    %cst_46 = arith.constant 3.200000e+01 : f32
    %100 = vector.broadcast %cst_46 : f32 to vector<8x1xf32>
    %101 = arith.divf %99, %100 : vector<8x1xf32>
    %cst_47 = arith.constant 9.99999974E-6 : f32
    %102 = vector.broadcast %cst_47 : f32 to vector<8x1xf32>
    %103 = arith.addf %101, %102 : vector<8x1xf32>
    %104 = math.rsqrt %103 : vector<8x1xf32>
    %105 = vector.broadcast %104 : vector<8x1xf32> to vector<8x32xf32>
    %106 = arith.mulf %96, %105 : vector<8x32xf32>
    %107 = vector.broadcast %2 : vector<1x32xf32> to vector<8x32xf32>
    %108 = arith.mulf %106, %107 : vector<8x32xf32>
    %109 = vector.broadcast %3 : vector<1x32xf32> to vector<8x32xf32>
    %110 = arith.addf %108, %109 : vector<8x32xf32>
    %c0_48 = arith.constant 0 : index
    %c0_49 = arith.constant 0 : index
    %111 = vector.load %arg10[%c0_48, %c0_49] : memref<32x64xf32, #tpu.memory_space<vmem>>, vector<32x64xf32>
    %cst_50 = arith.constant dense<0.000000e+00> : vector<8x64xf32>
    %112 = tpu.matmul %110, %111, %cst_50 {dimension_numbers = #tpu.dot_dimension_numbers<[1], [0], [0], [1], [0, 0, 1, 1], [], []>} : vector<8x32xf32>, vector<32x64xf32>, vector<8x64xf32> -> vector<8x64xf32>
    %113 = vector.broadcast %6 : vector<1x64xf32> to vector<8x64xf32>
    %114 = arith.addf %112, %113 : vector<8x64xf32>
    %cst_51 = arith.constant 0.000000e+00 : f32
    %115 = vector.broadcast %cst_51 : f32 to vector<8x64xf32>
    %116 = arith.maximumf %114, %115 : vector<8x64xf32>
    %c0_52 = arith.constant 0 : index
    %c0_53 = arith.constant 0 : index
    %117 = vector.load %arg12[%c0_52, %c0_53] : memref<64x32xf32, #tpu.memory_space<vmem>>, vector<64x32xf32>
    %cst_54 = arith.constant dense<0.000000e+00> : vector<8x32xf32>
    %118 = tpu.matmul %116, %117, %cst_54 {dimension_numbers = #tpu.dot_dimension_numbers<[1], [0], [0], [1], [0, 0, 1, 1], [], []>} : vector<8x64xf32>, vector<64x32xf32>, vector<8x32xf32> -> vector<8x32xf32>
    %119 = vector.broadcast %7 : vector<1x32xf32> to vector<8x32xf32>
    %120 = arith.addf %118, %119 : vector<8x32xf32>
    %121 = arith.addf %90, %120 : vector<8x32xf32>
    %122 = vector.shape_cast %121 : vector<8x32xf32> to vector<1x8x32xf32>
    %c0_55 = arith.constant 0 : index
    %c0_56 = arith.constant 0 : index
    %c0_57 = arith.constant 0 : index
    %123 = vector.load %arg14[%c0_55, %c0_56, %c0_57] : memref<1x8x32xf32, #tpu.memory_space<vmem>>, vector<1x8x32xf32>
    tpu.vector_store %arg14[%c0_55, %c0_56, %c0_57], %122 {strides = array<i32>} : memref<1x8x32xf32, #tpu.memory_space<vmem>>, vector<1x8x32xf32>,
    return
  }
  func.func @transform_0(%arg0: i32) -> (i32, i32, i32) {
    %c0_i32 = arith.constant 0 : i32
    %c0_i32_0 = arith.constant 0 : i32
    %c0_i32_1 = arith.constant 0 : i32
    return %arg0, %c0_i32, %c0_i32_0 : i32, i32, i32
  }
  func.func @transform_1(%arg0: i32) -> (i32, i32) {
    %c0_i32 = arith.constant 0 : i32
    %c0_i32_0 = arith.constant 0 : i32
    %c0_i32_1 = arith.constant 0 : i32
    return %c0_i32, %c0_i32_0 : i32, i32
  }
  func.func @transform_2(%arg0: i32) -> (i32, i32) {
    %c0_i32 = arith.constant 0 : i32
    %c0_i32_0 = arith.constant 0 : i32
    %c0_i32_1 = arith.constant 0 : i32
    return %c0_i32, %c0_i32_0 : i32, i32
  }
  func.func @transform_3(%arg0: i32) -> (i32, i32) {
    %c0_i32 = arith.constant 0 : i32
    %c0_i32_0 = arith.constant 0 : i32
    %c0_i32_1 = arith.constant 0 : i32
    return %c0_i32, %c0_i32_0 : i32, i32
  }
  func.func @transform_4(%arg0: i32) -> (i32, i32) {
    %c0_i32 = arith.constant 0 : i32
    %c0_i32_0 = arith.constant 0 : i32
    %c0_i32_1 = arith.constant 0 : i32
    return %c0_i32, %c0_i32_0 : i32, i32
  }
  func.func @transform_5(%arg0: i32) -> (i32, i32) {
    %c0_i32 = arith.constant 0 : i32
    %c0_i32_0 = arith.constant 0 : i32
    %c0_i32_1 = arith.constant 0 : i32
    return %c0_i32, %c0_i32_0 : i32, i32
  }
  func.func @transform_6(%arg0: i32) -> (i32, i32) {
    %c0_i32 = arith.constant 0 : i32
    %c0_i32_0 = arith.constant 0 : i32
    %c0_i32_1 = arith.constant 0 : i32
    return %c0_i32, %c0_i32_0 : i32, i32
  }
  func.func @transform_7(%arg0: i32) -> (i32, i32) {
    %c0_i32 = arith.constant 0 : i32
    %c0_i32_0 = arith.constant 0 : i32
    %c0_i32_1 = arith.constant 0 : i32
    return %c0_i32, %c0_i32_0 : i32, i32
  }
  func.func @transform_8(%arg0: i32) -> (i32, i32) {
    %c0_i32 = arith.constant 0 : i32
    %c0_i32_0 = arith.constant 0 : i32
    %c0_i32_1 = arith.constant 0 : i32
    return %c0_i32, %c0_i32_0 : i32, i32
  }
  func.func @transform_9(%arg0: i32) -> (i32, i32) {
    %c0_i32 = arith.constant 0 : i32
    %c0_i32_0 = arith.constant 0 : i32
    %c0_i32_1 = arith.constant 0 : i32
    return %c0_i32, %c0_i32_0 : i32, i32
  }
  func.func @transform_10(%arg0: i32) -> (i32, i32) {
    %c0_i32 = arith.constant 0 : i32
    %c0_i32_0 = arith.constant 0 : i32
    %c0_i32_1 = arith.constant 0 : i32
    return %c0_i32, %c0_i32_0 : i32, i32
  }
  func.func @transform_11(%arg0: i32) -> (i32, i32) {
    %c0_i32 = arith.constant 0 : i32
    %c0_i32_0 = arith.constant 0 : i32
    %c0_i32_1 = arith.constant 0 : i32
    return %c0_i32, %c0_i32_0 : i32, i32
  }
  func.func @transform_12(%arg0: i32) -> (i32, i32) {
    %c0_i32 = arith.constant 0 : i32
    %c0_i32_0 = arith.constant 0 : i32
    %c0_i32_1 = arith.constant 0 : i32
    return %c0_i32, %c0_i32_0 : i32, i32
  }
  func.func @transform_13(%arg0: i32) -> (i32, i32, i32) {
    %c0_i32 = arith.constant 0 : i32
    %c0_i32_0 = arith.constant 0 : i32
    %c0_i32_1 = arith.constant 0 : i32
    return %arg0, %c0_i32, %c0_i32_0 : i32, i32, i32
  }
}

</mosaic_0001>

<bundles_post_ra>
// kernel: tpu_custom_call.1
= control target key start
LH: loop header
LB: loop body
LE: loop exit
PB: predicated region body
PF: predicated region fallthrough
CT: control target
= control target key end

     0   :  { %s1498_s0 = inlined_call_operand.hbm [shape: f32[2,8,32], index: 0, kind: input, shape index: {}]   ;;  %s1499_s1 = inlined_call_operand.hbm [shape: f32[1,32], index: 1, kind: input, shape index: {}]   ;;  %s1500_s2 = inlined_call_operand.vmem [shape: f32[1,32], index: 2, kind: input, shape index: {}]   ;;  %s1501_s3 = inlined_call_operand.vmem [shape: f32[32,96], index: 3, kind: input, shape index: {}]   ;;  %s1502_s4 = inlined_call_operand.vmem [shape: f32[1,96], index: 4, kind: input, shape index: {}]   ;;  %s1503_s5 = inlined_call_operand.vmem [shape: f32[32,32], index: 5, kind: input, shape index: {}]   ;;  %s1504_s6 = inlined_call_operand.vmem [shape: f32[1,32], index: 6, kind: input, shape index: {}]   ;;  %s1505_s7 = inlined_call_operand.vmem [shape: f32[1,32], index: 7, kind: input, shape index: {}]   ;;  %s1506_s8 = inlined_call_operand.vmem [shape: f32[1,32], index: 8, kind: input, shape index: {}]   ;;  %s1507_s9 = inlined_call_operand.vmem [shape: f32[32,64], index: 9, kind: input, shape index: {}]   ;;  %s1508_s10 = inlined_call_operand.vmem [shape: f32[1,64], index: 10, kind: input, shape index: {}]   ;;  %s1509_s11 = inlined_call_operand.vmem [shape: f32[64,32], index: 11, kind: input, shape index: {}]   ;;  %s1510_s12 = inlined_call_operand.vmem [shape: f32[1,32], index: 12, kind: input, shape index: {}]   ;;  %s1511_s13 = inlined_call_operand.hbm [shape: f32[2,8,32], index: 13, kind: output, shape index: {}]  }
   0x1   :  { %1519 = sst [smem:[#allocation18_spill]] %s1499_s1 }
   0x2   :  { %18 = vsyncpa [#allocation4], 0 }
   0x3   :  { %20 = vsyncpa [#allocation4 + $0x1], 0 }
   0x4   :  { %21 = vsyncpa [#allocation7], 0 }
   0x5   :  { %22 = vsyncpa [#allocation5], 0 }
   0x6   :  { %24 = vsyncpa [#allocation5 + $0x1], 0  ;;  %s1240_s25 = smov 0   ;;  %s1242_s26 = smov 0  }
   0x7   :  { %s1244_s27 = smov 0   ;;  %s1246_s28 = smov 0  }
   0x8 LB: > { %1520 = sst [smem:[#allocation12_spill]] %s1148_s25  ;;  %s1261_s29 = sadd.s32 4294967295, %s1160_s28   ;;  %s1160_s28 = sphi %s1246_s28, %s1536_s28   ;;  %s1156_s27 = sphi %s1244_s27, %s1538_s27   ;;  %s1152_s26 = sphi %s1242_s26, %s1540_s26   ;;  %s1148_s25 = sphi %s1240_s25, %s1539_s25  }
   0x9   : > { %1521 = sst [smem:[#allocation13_spill]] %s1156_s27  ;;  %s920_s30 = sadd.s32 4294967294, %s1160_s28  }
   0xa   : > { %p50_p0 = scmp.ne.s32.totalorder %s1152_s26, %s1148_s25  ;;  %p51_p1 = scmp.eq.s32.totalorder %s1261_s29, 0 }
   0xb   : > { %p326_p2 = scmp.eq.s32.totalorder %s1261_s29, 1  ;;  %p332_p3 = scmp.eq.s32.totalorder %s920_s30, 1 }
   0xc   : > { %p1270_p4 = por %p51_p1, %p50_p0  ;;  %p921_p5 = scmp.ge.s32.totalorder %s1160_s28, 1 }
   0xd   : > { %p1275_p6 = por %p332_p3, %p50_p0  ;;  %p339_p7 = scmp.lt.s32.totalorder %s1160_s28, 3 }
   0xe   : > { %s1525_s1 = sld [smem:[#allocation18_spill]]  ;;  %s1162_s20 = smov [#allocation6]  }
   0xf   : > { %s1523_s15 = scalar_select %p1275_p6, 1, 0 }
  0x10   : > { %p1283_p8 = pnand %p921_p5, %p339_p7  ;;  %s353_s21 = sshll.u32 %s1162_s20, 4  ;;  %s354_s21 = int_to_ptr.vmem [resolvable:$true] %s353_s21 }
  0x11   : > { %1524 = sst [smem:[#allocation14_spill]] %s1523_s15  ;;  %s1293_s22 = sadd.s32 1, %s1160_s28  }
  0x12   : > { %p952_p10 = pneg %p1283_p8  ;;  %1527 = sst [smem:[#allocation15_spill]] %s1293_s22 }
  0x13   : > { %s37_s23 = sadd.s32 1, %s1156_s27  ;;  %s34_s24 = ssub.s32 %s1160_s28, %s1293_s22 }
  0x14   : > { %s351_s18 = sshll.u32 %s1525_s1, 4  ;;  %p953_p11 = pnand %p952_p10, %p51_p1  ;;  %s352_s18 = int_to_ptr.hbm [resolvable:$true] %s351_s18 }
  0x15   : > { %p35_p12 = scmp.eq.s32.totalorder %s34_s24, 0  ;;  %p44_p13 = scmp.ne.s32.totalorder %s1156_s27, %s1152_s26 }
  0x16   : > { %955 = dma.hbm_to_vmem [thread:$0]  (!%p953_p11), %s352_s18, 16, %s354_s21, [#allocation7]  }
  0x17   : > { %p45_p0 = scmp.eq.s32.totalorder %s1160_s28, 0  ;;  %p1306_p3 = por %p326_p2, %p44_p13 }
  0x18   : > { %s1302_s30 = scalar_select %p35_p12, %s1156_s27, %s37_s23  }
  0x19   : > { %s1529_s16 = scalar_select %p1306_p3, 1, 0 }
  0x1a   : > { %1528 = sst [smem:[#allocation16_spill]] %s1302_s30  ;;  %p965_p5 = scmp.lt.s32.totalorder %s1160_s28, 2 }
  0x1b   : > { %1530 = sst [smem:[#allocation17_spill]] %s1529_s16  ;;  %s397_s17 = sand.u32 1, %s1156_s27  }
  0x1c   : > { %s925_s20 = sshll.u32 %s1160_s28, 3  ;;  %p46_p7 = por %p45_p0, %p44_p13 }
  0x1d   : > { %s924_s1 = sshll.u32 %s397_s17, 3  ;;  %s405_s22 = scalar_lea.hbm %s1498_s0, %s925_s20 }
  0x1e   : > { %s407_s18 = sshll.u32 %s405_s22, 4  ;;  %s401_s21 = scalar_lea.vmem [#allocation3], %s924_s1  ;;  %s408_s18 = int_to_ptr.hbm [resolvable:$true] %s407_s18 }
  0x1f   : > { %s409_s24 = sshll.u32 %s401_s21, 4  ;;  %p1316_p10 = pnand %p965_p5, %p46_p7  ;;  %s410_s24 = int_to_ptr.vmem [resolvable:$true] %s409_s24 }
  0x20   : > { %s398_s30 = scalar_lea.sflag [#allocation4], %s397_s17  ;;  %s1060_s16 = sshra.s32 %s408_s18, 4  ;;  %s1061_s16 = int_to_ptr.hbm [resolvable:$true] %s1060_s16 }
  0x21   : > { %s1062_s27 = scalar_lea.hbm %s1061_s16, 8  ;;  %p1064_p11 = pneg %p1316_p10 }
  0x22   : > { %p1063_p2 = scmp.ne.s32.totalorder %s1061_s16, %s1062_s27  ;;  %s1067_s1 = scalar_lea.hbm %s1498_s0, 16 }
  0x23   : > { %p1068_p0 = scmp.lt.s32.totalorder %s1061_s16, %s1498_s0  ;;  %p1069_p5 = scmp.lt.s32.totalorder %s1067_s1, %s1062_s27 }
  0x24   : > { %p1065_p12 = pnand %p1064_p11, %p1063_p2 }
  0x25   : > { %p1070_p7 = por %p1069_p5, %p1068_p0 }
  0x26   : > { %p1066_p13 = pneg %p1065_p12 }
  0x28   : > { %p1071_p9 = pnand %p1070_p7, %p1066_p13 }
  0x2a   : > { %1074 = shalt.err (!%p1071_p9)
}
  0x2b   : > { %959 = dma.hbm_to_vmem [thread:$0]  (!%p1316_p10), %s408_s18, 128, %s410_s24, %s398_s30  }
  0x2c   : > { %418 = sbr.rel (%p1283_p8) target bundleno = 1902 (0x76e), region = 72  ;;  %s1333_s17 = sand.u32 (!%p1283_p8), 1, %s1152_s26  }
  0x2d   : > { %s927_s21 = sshll.u32 (!%p1283_p8), %s1333_s17, 3  ;;  %s421_s25 = scalar_lea.sflag (!%p1283_p8), [#allocation4], %s1333_s17 }
  0x2e   : > { %s424_s27 = scalar_lea.vmem (!%p1283_p8), [#allocation3], %s927_s21 }
  0x31   : > { %1135 = dma.done.wait (%p1270_p4), %s421_s25, 128  }
  0x32   : > { %1137 = vsyncadd (%p1270_p4), %s421_s25, 4294967168 }
  0x33   : > { %1139 = dma.done.wait (%p51_p1), [#allocation7], 16  }
  0x34   : > { %1141 = vsyncadd (%p51_p1), [#allocation7], 4294967280  ;;  %vm482_vm0 = vcmask 261120   ;;  %v1347_v0 = vld [vmem:[%s424_s27] sm:$0xff]  ;;  %v1163_v2 = vmov 32.0   ;;  %v523_v14 = vld [vmem:[%s1501_s3 + $0x18] sm:$0xff] }
  0x35   : > { %v483_v1 = vsel %vm482_vm0, %v1347_v0, 0.0  ;;  %1016 = vrcp.f32 %v1163_v2  ;;  %542 = vmatpush.msra.mxu0 %v523_v14  ;;  %v522_v15 = vld [vmem:[%s1501_s3 + $0x10] sm:$0xff]  ;;  %v521_v16 = vld [vmem:[%s1501_s3 + $0x8] sm:$0xff]  ;;  %v520_v17 = vld [vmem:[%s1501_s3] sm:$0xff]  ;;  %s1164_s27 = smov 112   ;;  %s1165_s14 = smov 96  }
  0x36   : > { %484 = vadd.xlane.f32.xlu0 %v483_v1  ;;  %v1008_v27 = vld [vmem:[#allocation6] ss:$0 sm:$0xff]  ;;  %v1009_v30 = vld [vmem:[%s1500_s2] ss:$0 sm:$0xff]  ;;  %s1166_s19 = smov 80   ;;  %vm553_vm5 = vcmask 130048  }
  0x37   : > { %543 = vmatpush.msra.mxu0 %v522_v15  ;;  %v1010_v33 = vld [vmem:[%s1502_s4] ss:$0 sm:$0xff]  ;;  %vm578_vm6 = vcmask 64512   ;;  %s1167_s30 = smov 48   ;;  %s1168_s16 = smov 64   ;;  %vm692_vm7 = vcmask 261248  }
  0x38   : > { %s1169_s18 = smov 16   ;;  %vm798_vm11 = vcmask 523264   ;;  %s941_s23 = sshll.u32 %s1261_s29, 3 }
  0x39   : > { %544 = vmatpush.msra.mxu0 %v521_v16  ;;  %s825_s29 = scalar_lea.sflag [#allocation5], %s1333_s17 }
  0x3b   : > { %v1017_v3 = vpop.eup %1016  ;;  %545 = vmatpush.msra.mxu0 %v520_v17 }
  0x3c   : > { %v487_v4 = vmul.f32 32.0, %v1017_v3  ;;  %vm491_vm1 = vweird.f32 %v1017_v3 }
  0x3e   : > { %v488_v5 = vsub.f32 1.0, %v487_v4 }
  0x40   : > { %v489_v6 = vmul.f32 %v1017_v3, %v488_v5 }
  0x42   : > { %v490_v7 = vadd.f32 %v1017_v3, %v489_v6  ;;  %v698_v6 = vld [vmem:[%s1503_s5 + $0x18] sm:$0xff] }
  0x44   : > { %v1351_v8 = vsel %vm491_vm1, %v1017_v3, %v490_v7  ;;  %v697_v7 = vld [vmem:[%s1503_s5 + $0x10] sm:$0xff] }
  0xa9   : > { %v485_v9 = vpop.xlane.xlu0 %484 }
  0xaa   : > { %v493_v10 = vmul.f32 %v1351_v8, %v485_v9  ;;  %v696_v9 = vld [vmem:[%s1503_s5 + $0x8] sm:$0xff] }
  0xac   : > { %v494_v11 = vsub.f32 %v1347_v0, %v493_v10  ;;  %v695_v10 = vld [vmem:[%s1503_s5] sm:$0xff] }
  0xae   : > { %v495_v12 = vmul.f32 %v494_v11, %v494_v11 }
  0xb0   : > { %v496_v13 = vsel %vm482_vm0, %v495_v12, 0.0 }
  0xb1   : > { %497 = vadd.xlane.f32.xlu0 %v496_v13  ;;  %v1011_v13 = vld [vmem:[%s1504_s6] ss:$0 sm:$0xff] }
 0x124   : > { %v498_v18 = vpop.xlane.xlu0 %497 }
 0x125   : > { %v499_v19 = vmul.f32 %v498_v18, %v1351_v8 }
 0x127   : > { %v500_v20 = vadd.f32 1e-05, %v499_v19 }
 0x129   : > { %1018 = vrsqrt.f32 %v500_v20  ;;  %vm507_vm3 = vweird.f32 %v500_v20 }
 0x12f   : > { %v1019_v21 = vpop.eup %1018 }
 0x130   : > { %v502_v22 = vmul.f32 %v1019_v21, %v500_v20  ;;  %vm508_vm2 = vweird.f32 %v1019_v21 }
 0x131   : > { %vm509_vm4 = vmor %vm507_vm3, %vm508_vm2 }
 0x132   : > { %v503_v23 = vmul.f32 %v1019_v21, %v502_v22 }
 0x134   : > { %v504_v24 = vmul.f32 0.5, %v503_v23  ;;  %v759_v23 = vld [vmem:[%s1507_s9 + $0x18] sm:$0xff] }
 0x136   : > { %v505_v25 = vsub.f32 1.5, %v504_v24  ;;  %v757_v24 = vld [vmem:[%s1507_s9 + $0x8] sm:$0xff] }
 0x138   : > { %v506_v26 = vmul.f32 %v1019_v21, %v505_v25  ;;  %v756_v25 = vld [vmem:[%s1507_s9] sm:$0xff] }
 0x13a   : > { %v510_v28 = vsel %vm509_vm4, %v1019_v21, %v506_v26  ;;  %v794_v26 = vld [vmem:[%s1509_s11 + $0x38] sm:$0xff] }
 0x13b   : > { %v511_v29 = vmul.f32 %v510_v28, %v494_v11  ;;  %810 = vmatpush.msrb.mxu0 %v794_v26  ;;  %v792_v28 = vld [vmem:[%s1509_s11 + $0x28] sm:$0xff] }
 0x13d   : > { %v515_v31 = vmul.f32 %v1008_v27, %v511_v29  ;;  %v793_v27 = vld [vmem:[%s1509_s11 + $0x30] sm:$0xff] }
 0x13e   : > { %811 = vmatpush.msrb.mxu0 %v793_v27 }
 0x13f   : > { %v519_v32 = vadd.f32 %v1009_v30, %v515_v31  ;;  %v791_v31 = vld [vmem:[%s1509_s11 + $0x20] sm:$0xff] }
 0x140   : > { %812 = vmatpush.msrb.mxu0 %v792_v28 }
 0x141   : > { %930 = vmatmul.msk.f32.vlgmr.msra.gmra.mxu0 %vm482_vm0, %v519_v32 }
 0x142   : > { %813 = vmatpush.msrb.mxu0 %v791_v31 }
 0x1be   : > { %v547_v34 = vpop.f32.mrf.mxu0 }
 0x1bf   : > { %v548_v35 = vadd.f32 %v1010_v33, %v547_v34  ;;  %v790_v33 = vld [vmem:[%s1509_s11 + $0x18] sm:$0xff] }
 0x1c0   : > { %814 = vmatpush.msrb.mxu0 %v790_v33 }
 0x1c1   : > { %620 = vrot.lane.b32.xlu2 %v548_v35, %s1164_s27  ;;  %551 = vrot.lane.b32.xlu1 %v548_v35, %s1165_s14  ;;  %s835_s27 = scalar_lea.hbm %s1511_s13, %s941_s23  ;;  %s472_s14 = scalar_lea.vmem [#allocation8], %s927_s21 }
 0x1c2   : > { %s1110_s21 = scalar_lea.hbm %s1511_s13, 16 }
 0x1c9   : > { %622 = vrot.lane.b32.xlu1 %v548_v35, %s1166_s19  ;;  %s837_s19 = sshll.u32 %s472_s14, 4  ;;  %s838_s19 = int_to_ptr.vmem [resolvable:$true] %s837_s19 }
 0x21b   : > { %v621_v38 = vpop.permute.xlu2 %620 }
 0x233   : > { %v552_v36 = vpop.permute.xlu1 %551 }
 0x234   : > { %931 = vmatpush.xpose.msk.msra.mxu1 %vm553_vm5, %v552_v36 }
 0x237   : > { %932 = vmatmul.msk.f32.vlgmr.msra.gmra.mxu1 %vm553_vm5, %v548_v35 }
 0x238   : > { %717 = vmatpush.msrb.mxu1 %v698_v6 }
 0x23a   : > { %718 = vmatpush.msrb.mxu1 %v697_v7 }
 0x23b   : > { %v623_v37 = vpop.permute.xlu1 %622 }
 0x23c   : > { %934 = vmatpush.xpose.msk.msra.mxu3 %vm553_vm5, %v623_v37  ;;  %719 = vmatpush.msrb.mxu1 %v696_v9 }
 0x23e   : > { %720 = vmatpush.msrb.mxu1 %v695_v10 }
 0x23f   : > { %935 = vmatmul.msk.f32.vlgmr.msra.gmra.mxu3 %vm553_vm5, %v621_v38 }
 0x240   : > { %778 = vmatpush.msrb.mxu3 %v759_v23 }
 0x2b4   : > { %v575_v39 = vpop.f32.mrf.mxu1 }
 0x2b5   : > { %v579_v40 = vsel %vm578_vm6, %v575_v39, -inf }
 0x2b6   : > { %580 = vmax.xlane.f32.xlu2 %v579_v40 }
 0x2c2   : > { %v645_v41 = vpop.f32.mrf.mxu3 }
 0x2c3   : > { %v648_v42 = vsel %vm578_vm6, %v645_v41, -inf }
 0x2c4   : > { %649 = vmax.xlane.f32.xlu0 %v648_v42  ;;  %v1013_v42 = vld [vmem:[%s1506_s8] ss:$0 sm:$0xff] }
 0x2ce   : > { %662 = vrot.lane.b32.xlu2 %v548_v35, %s1167_s30  ;;  %s839_s30 = sshll.u32 %s835_s27, 4  ;;  %s840_s30 = int_to_ptr.hbm [resolvable:$true] %s839_s30 }
 0x329   : > { %v581_v43 = vpop.xlane.xlu2 %580 }
 0x32a   : > { %v582_v44 = vsub.f32 %v575_v39, %v581_v43  ;;  %v1012_v39 = vld [vmem:[%s1505_s7] ss:$0 sm:$0xff] }
 0x32c   : > { %v583_v45 = vmul.f32 1.442695, %v582_v44 }
 0x32e   : > { %1020 = vpow2.f32 %v583_v45  ;;  %v789_v45 = vld [vmem:[%s1509_s11 + $0x10] sm:$0xff] }
 0x32f   : > { %815 = vmatpush.msrb.mxu0 %v789_v45 }
 0x331   : > { %v663_v1 = vpop.permute.xlu2 %662 }
 0x334   : > { %v1021_v46 = vpop.eup %1020 }
 0x335   : > { %v585_v47 = vsel %vm578_vm6, %v1021_v46, 0.0 }
 0x336   : > { %586 = vadd.xlane.f32.xlu1 %v585_v47  ;;  %v787_v47 = vld [vmem:[%s1509_s11] sm:$0xff] }
 0x337   : > { %v650_v48 = vpop.xlane.xlu0 %649 }
 0x338   : > { %v651_v49 = vsub.f32 %v645_v41, %v650_v48  ;;  %v1014_v48 = vld [vmem:[%s1508_s10] ss:$0 sm:$0xff] }
 0x33a   : > { %v652_v50 = vmul.f32 1.442695, %v651_v49 }
 0x33c   : > { %1022 = vpow2.f32 %v652_v50 }
 0x342   : > { %v1023_v51 = vpop.eup %1022 }
 0x343   : > { %v654_v52 = vsel %vm578_vm6, %v1023_v51, 0.0 }
 0x344   : > { %655 = vadd.xlane.f32.xlu0 %v654_v52  ;;  %v1015_v52 = vld [vmem:[%s1510_s12] ss:$0 sm:$0xff] }
 0x358   : > { %593 = vrot.lane.b32.xlu0 %v548_v35, %s1168_s16  ;;  %s1104_s16 = sshra.s32 %s840_s30, 4  ;;  %s1105_s16 = int_to_ptr.hbm [resolvable:$true] %s1104_s16 }
 0x359   : > { %p1111_p9 = scmp.lt.s32.totalorder %s1105_s16, %s1511_s13 }
 0x3a9   : > { %v587_v53 = vpop.xlane.xlu1 %586 }
 0x3aa   : > { %1024 = vrcp.f32 %v587_v53 }
 0x3b0   : > { %v1025_v55 = vpop.eup %1024 }
 0x3b1   : > { %v589_v56 = vmul.f32 %v1025_v55, %v587_v53 }
 0x3b3   : > { %v590_v57 = vsub.f32 2.0, %v589_v56 }
 0x3b5   : > { %v591_v59 = vmul.f32 %v1025_v55, %v590_v57 }
 0x3b7   : > { %v656_v54 = vpop.xlane.xlu0 %655  ;;  %v592_v63 = vmul.f32 %v1021_v46, %v591_v59  ;;  %v788_v46 = vld [vmem:[%s1509_s11 + $0x8] sm:$0xff] }
 0x3b8   : > { %1026 = vrcp.f32 %v656_v54  ;;  %816 = vmatpush.msrb.mxu0 %v788_v46 }
 0x3ba   : > { %817 = vmatpush.msrb.mxu0 %v787_v47 }
 0x3be   : > { %v1027_v58 = vpop.eup %1026 }
 0x3bf   : > { %v658_v60 = vmul.f32 %v1027_v58, %v656_v54 }
 0x3c1   : > { %v659_v61 = vsub.f32 2.0, %v658_v60 }
 0x3c3   : > { %v660_v2 = vmul.f32 %v1027_v58, %v659_v61 }
 0x3c5   : > { %v661_v3 = vmul.f32 %v1023_v51, %v660_v2 }
 0x3ca   : > { %v594_v62 = vpop.permute.xlu0 %593 }
 0x3cb   : > { %614 = vmatpush.msra.mxu2 %v594_v62 }
 0x3cc   : > { %933 = vmatmul.msk.f32.vlgmr.msra.gmra.mxu2 %vm578_vm6, %v592_v63 }
 0x3cd   : > { %683 = vmatpush.msrb.mxu2 %v663_v1 }
 0x3d4   : > { %936 = vmatmul.msk.f32.vlgmr.msrb.gmra.mxu2 %vm578_vm6, %v661_v3 }
 0x44f   : > { %v616_v4 = vpop.f32.mrf.mxu2 }
 0x450   : > { %619 = vst.msk [vmem:[#allocation2] sm:$0xff] %vm553_vm5, %v616_v4 }
 0x457   : > { %v685_v5 = vpop.f32.mrf.mxu2 }
 0x458   : > { %689 = vrot.lane.b32.xlu0 %v685_v5, %s1169_s18  ;;  %s1106_s18 = scalar_lea.hbm %s1105_s16, 8 }
 0x459   : > { %p1107_p1 = scmp.ne.s32.totalorder %s1105_s16, %s1106_s18  ;;  %p1112_p10 = scmp.lt.s32.totalorder %s1110_s21, %s1106_s18 }
 0x45b   : > { %p1108_p4 = pnand %p1107_p1, %p1306_p3  ;;  %p1113_p2 = por %p1112_p10, %p1111_p9 }
 0x45d   : > { %p1109_p8 = pneg %p1108_p4 }
 0x45f   : > { %p1114_p11 = pnand %p1113_p2, %p1109_p8 }
 0x4ca   : > { %v690_v11 = vpop.permute.xlu0 %689 }
 0x4cb   : > { %693 = vst.msk [vmem:[#allocation2] sm:$0xff] %vm692_vm7, %v690_v11 }
 0x4d2   : > { %v694_v12 = vld [vmem:[#allocation2] sm:$0xff] }
 0x4d3   : > { %937 = vmatmul.msk.f32.vlgmr.msrb.gmra.mxu1 %vm482_vm0, %v694_v12 }
 0x550   : > { %v722_v14 = vpop.f32.mrf.mxu1 }
 0x551   : > { %v723_v15 = vadd.f32 %v1011_v13, %v722_v14 }
 0x553   : > { %v1404_v16 = vadd.f32 %v723_v15, %v1347_v0  ;;  %v758_v0 = vld [vmem:[%s1507_s9 + $0x10] sm:$0xff] }
 0x554   : > { %779 = vmatpush.msrb.mxu3 %v758_v0 }
 0x555   : > { %v726_v17 = vsel %vm482_vm0, %v1404_v16, 0.0 }
 0x556   : > { %727 = vadd.xlane.f32.xlu1 %v726_v17  ;;  %780 = vmatpush.msrb.mxu3 %v757_v24 }
 0x558   : > { %781 = vmatpush.msrb.mxu3 %v756_v25 }
 0x5c9   : > { %v728_v18 = vpop.xlane.xlu1 %727 }
 0x5ca   : > { %v729_v19 = vmul.f32 %v728_v18, %v1351_v8 }
 0x5cc   : > { %v730_v20 = vsub.f32 %v1404_v16, %v729_v19 }
 0x5ce   : > { %v731_v21 = vmul.f32 %v730_v20, %v730_v20 }
 0x5d0   : > { %v732_v22 = vsel %vm482_vm0, %v731_v21, 0.0 }
 0x5d1   : > { %733 = vadd.xlane.f32.xlu0 %v732_v22 }
 0x644   : > { %v734_v29 = vpop.xlane.xlu0 %733 }
 0x645   : > { %v735_v30 = vmul.f32 %v734_v29, %v1351_v8 }
 0x647   : > { %v736_v32 = vadd.f32 1e-05, %v735_v30 }
 0x649   : > { %1028 = vrsqrt.f32 %v736_v32  ;;  %vm743_vm9 = vweird.f32 %v736_v32 }
 0x64f   : > { %v1029_v34 = vpop.eup %1028 }
 0x650   : > { %v738_v35 = vmul.f32 %v1029_v34, %v736_v32  ;;  %vm744_vm8 = vweird.f32 %v1029_v34 }
 0x651   : > { %vm745_vm10 = vmor %vm743_vm9, %vm744_vm8 }
 0x652   : > { %v739_v36 = vmul.f32 %v1029_v34, %v738_v35 }
 0x654   : > { %v740_v37 = vmul.f32 0.5, %v739_v36 }
 0x656   : > { %v741_v38 = vsub.f32 1.5, %v740_v37 }
 0x658   : > { %v742_v8 = vmul.f32 %v1029_v34, %v741_v38 }
 0x65a   : > { %v746_v40 = vsel %vm745_vm10, %v1029_v34, %v742_v8 }
 0x65b   : > { %v747_v41 = vmul.f32 %v746_v40, %v730_v20 }
 0x65d   : > { %v751_v43 = vmul.f32 %v1012_v39, %v747_v41 }
 0x65f   : > { %v755_v44 = vadd.f32 %v1013_v42, %v751_v43 }
 0x661   : > { %938 = vmatmul.msk.f32.vlgmr.msrb.gmra.mxu3 %vm482_vm0, %v755_v44 }
 0x6e4   : > { %v783_v49 = vpop.f32.mrf.mxu3 }
 0x6e5   : > { %v784_v50 = vadd.f32 %v1014_v48, %v783_v49 }
 0x6e7   : > { %v786_v51 = vmax.f32 %v784_v50, 0.0 }
 0x6e9   : > { %939 = vmatmul.msk.f32.vlgmr.msrb.gmra.mxu0 %vm798_vm11, %v786_v51 }
 0x766   : > { %v819_v53 = vpop.f32.mrf.mxu0 }
 0x767   : > { %v820_v54 = vadd.f32 %v1015_v52, %v819_v53 }
 0x769   : > { %v822_v55 = vadd.f32 %v820_v54, %v1404_v16 }
 0x76b   : > { %823 = vst.msk [vmem:[%s472_s14] sm:$0xff] %vm482_vm0, %v822_v55 }
 0x76c   : > { %1117 = shalt.err (!%p1114_p11)
}
 0x76d   : > { %950 = dma.vmem_to_hbm [thread:$0]  (%p1306_p3), %s838_s19, 128, %s840_s30, %s825_s29  }
 0x76e PF: > { %s1533_s17 = sld [smem:[#allocation12_spill]]  ;;  %p1535_p12 = scmp.ge.s32.totalorder %s1160_s28, 2 }
 0x770   : > { %p961_p13 = pnand %p1535_p12, %p1275_p6 }
 0x772   : > { %p962_p0 = pneg %p961_p13 }
 0x774   : > { %s851_s20 = sand.u32 1, %s1533_s17  }
 0x775   : > { %s852_s27 = scalar_lea.sflag [#allocation5], %s851_s20 }
 0x776   : > { %1143 = dma.done.wait (%p962_p0), %s852_s27, 128  }
 0x777   : > { %1145 = vsyncadd (%p962_p0), %s852_s27, 4294967168  ;;  %s1536_s28 = sld [smem:[#allocation15_spill]]  ;;  %s1539_s25 = smov %s1152_s26 }
 0x778   : > { %s1537_s14 = sld [smem:[#allocation13_spill]] }
 0x779   : > { %s1538_s27 = sld [smem:[#allocation16_spill]] }
 0x77d   : > { %p27_p5 = scmp.ge.s32.totalorder %s1536_s28, 4  }
 0x77e   : > { %s1540_s26 = smov %s1537_s14 }
 0x77f   :  { %29 = sbr.rel (!%p27_p5) target bundleno = 8 (0x8), region = 121 }
 0x784   :  { %858 = vsyncpa [#allocation4], 1 }
 0x785   :  { %860 = vsyncpa [#allocation4 + $0x1], 1 }
 0x786   :  { %861 = vsyncpa [#allocation7], 1 }
 0x787   :  { %862 = vsyncpa [#allocation5], 1 }
 0x788   :  { %864 = vsyncpa [#allocation5 + $0x1], 1 }

// kernel: tpu_custom_call.1
= control target key start
LH: loop header
LB: loop body
LE: loop exit
PB: predicated region body
PF: predicated region fallthrough
CT: control target
= control target key end

     0   :  { %s1498_s0 = inlined_call_operand.hbm [shape: f32[2,8,32], index: 0, kind: input, shape index: {}]   ;;  %s1499_s1 = inlined_call_operand.hbm [shape: f32[1,32], index: 1, kind: input, shape index: {}]   ;;  %s1500_s2 = inlined_call_operand.vmem [shape: f32[1,32], index: 2, kind: input, shape index: {}]   ;;  %s1501_s3 = inlined_call_operand.vmem [shape: f32[32,96], index: 3, kind: input, shape index: {}]   ;;  %s1502_s4 = inlined_call_operand.vmem [shape: f32[1,96], index: 4, kind: input, shape index: {}]   ;;  %s1503_s5 = inlined_call_operand.vmem [shape: f32[32,32], index: 5, kind: input, shape index: {}]   ;;  %s1504_s6 = inlined_call_operand.vmem [shape: f32[1,32], index: 6, kind: input, shape index: {}]   ;;  %s1505_s7 = inlined_call_operand.vmem [shape: f32[1,32], index: 7, kind: input, shape index: {}]   ;;  %s1506_s8 = inlined_call_operand.vmem [shape: f32[1,32], index: 8, kind: input, shape index: {}]   ;;  %s1507_s9 = inlined_call_operand.vmem [shape: f32[32,64], index: 9, kind: input, shape index: {}]   ;;  %s1508_s10 = inlined_call_operand.vmem [shape: f32[1,64], index: 10, kind: input, shape index: {}]   ;;  %s1509_s11 = inlined_call_operand.vmem [shape: f32[64,32], index: 11, kind: input, shape index: {}]   ;;  %s1510_s12 = inlined_call_operand.vmem [shape: f32[1,32], index: 12, kind: input, shape index: {}]   ;;  %s1511_s13 = inlined_call_operand.hbm [shape: f32[2,8,32], index: 13, kind: output, shape index: {}]  }
   0x1   :  { %1519 = sst [smem:[#allocation18_spill]] %s1499_s1 }
   0x2   :  { %18 = vsyncpa [#allocation4], 0 }
   0x3   :  { %20 = vsyncpa [#allocation4 + $0x1], 0 }
   0x4   :  { %21 = vsyncpa [#allocation7], 0 }
   0x5   :  { %22 = vsyncpa [#allocation5], 0 }
   0x6   :  { %24 = vsyncpa [#allocation5 + $0x1], 0  ;;  %s1240_s25 = smov 0   ;;  %s1242_s26 = smov 0  }
   0x7   :  { %s1244_s27 = smov 0   ;;  %s1246_s28 = smov 0  }
   0x8 LB: > { %1520 = sst [smem:[#allocation12_spill]] %s1148_s25  ;;  %s1261_s29 = sadd.s32 4294967295, %s1160_s28   ;;  %s1160_s28 = sphi %s1246_s28, %s1536_s28   ;;  %s1156_s27 = sphi %s1244_s27, %s1538_s27   ;;  %s1152_s26 = sphi %s1242_s26, %s1540_s26   ;;  %s1148_s25 = sphi %s1240_s25, %s1539_s25  }
   0x9   : > { %1521 = sst [smem:[#allocation13_spill]] %s1156_s27  ;;  %s920_s30 = sadd.s32 4294967294, %s1160_s28  }
   0xa   : > { %p50_p0 = scmp.ne.s32.totalorder %s1152_s26, %s1148_s25  ;;  %p51_p1 = scmp.eq.s32.totalorder %s1261_s29, 0 }
   0xb   : > { %p326_p2 = scmp.eq.s32.totalorder %s1261_s29, 1  ;;  %p332_p3 = scmp.eq.s32.totalorder %s920_s30, 1 }
   0xc   : > { %p1270_p4 = por %p51_p1, %p50_p0  ;;  %p921_p5 = scmp.ge.s32.totalorder %s1160_s28, 1 }
   0xd   : > { %p1275_p6 = por %p332_p3, %p50_p0  ;;  %p339_p7 = scmp.lt.s32.totalorder %s1160_s28, 3 }
   0xe   : > { %s1525_s1 = sld [smem:[#allocation18_spill]]  ;;  %s1162_s20 = smov [#allocation6]  }
   0xf   : > { %s1523_s15 = scalar_select %p1275_p6, 1, 0 }
  0x10   : > { %p1283_p8 = pnand %p921_p5, %p339_p7  ;;  %s353_s21 = sshll.u32 %s1162_s20, 4  ;;  %s354_s21 = int_to_ptr.vmem [resolvable:$true] %s353_s21 }
  0x11   : > { %1524 = sst [smem:[#allocation14_spill]] %s1523_s15  ;;  %s1293_s22 = sadd.s32 1, %s1160_s28  }
  0x12   : > { %p952_p10 = pneg %p1283_p8  ;;  %1527 = sst [smem:[#allocation15_spill]] %s1293_s22 }
  0x13   : > { %s37_s23 = sadd.s32 1, %s1156_s27  ;;  %s34_s24 = ssub.s32 %s1160_s28, %s1293_s22 }
  0x14   : > { %s351_s18 = sshll.u32 %s1525_s1, 4  ;;  %p953_p11 = pnand %p952_p10, %p51_p1  ;;  %s352_s18 = int_to_ptr.hbm [resolvable:$true] %s351_s18 }
  0x15   : > { %p35_p12 = scmp.eq.s32.totalorder %s34_s24, 0  ;;  %p44_p13 = scmp.ne.s32.totalorder %s1156_s27, %s1152_s26 }
  0x16   : > { %955 = dma.hbm_to_vmem [thread:$0]  (!%p953_p11), %s352_s18, 16, %s354_s21, [#allocation7]  }
  0x17   : > { %p45_p0 = scmp.eq.s32.totalorder %s1160_s28, 0  ;;  %p1306_p3 = por %p326_p2, %p44_p13 }
  0x18   : > { %s1302_s30 = scalar_select %p35_p12, %s1156_s27, %s37_s23  }
  0x19   : > { %s1529_s16 = scalar_select %p1306_p3, 1, 0 }
  0x1a   : > { %1528 = sst [smem:[#allocation16_spill]] %s1302_s30  ;;  %p965_p5 = scmp.lt.s32.totalorder %s1160_s28, 2 }
  0x1b   : > { %1530 = sst [smem:[#allocation17_spill]] %s1529_s16  ;;  %s397_s17 = sand.u32 1, %s1156_s27  }
  0x1c   : > { %s925_s20 = sshll.u32 %s1160_s28, 3  ;;  %p46_p7 = por %p45_p0, %p44_p13 }
  0x1d   : > { %s924_s1 = sshll.u32 %s397_s17, 3  ;;  %s405_s22 = scalar_lea.hbm %s1498_s0, %s925_s20 }
  0x1e   : > { %s407_s18 = sshll.u32 %s405_s22, 4  ;;  %s401_s21 = scalar_lea.vmem [#allocation3], %s924_s1  ;;  %s408_s18 = int_to_ptr.hbm [resolvable:$true] %s407_s18 }
  0x1f   : > { %s409_s24 = sshll.u32 %s401_s21, 4  ;;  %p1316_p10 = pnand %p965_p5, %p46_p7  ;;  %s410_s24 = int_to_ptr.vmem [resolvable:$true] %s409_s24 }
  0x20   : > { %s398_s30 = scalar_lea.sflag [#allocation4], %s397_s17  ;;  %s1060_s16 = sshra.s32 %s408_s18, 4  ;;  %s1061_s16 = int_to_ptr.hbm [resolvable:$true] %s1060_s16 }
  0x21   : > { %s1062_s27 = scalar_lea.hbm %s1061_s16, 8  ;;  %p1064_p11 = pneg %p1316_p10 }
  0x22   : > { %p1063_p2 = scmp.ne.s32.totalorder %s1061_s16, %s1062_s27  ;;  %s1067_s1 = scalar_lea.hbm %s1498_s0, 16 }
  0x23   : > { %p1068_p0 = scmp.lt.s32.totalorder %s1061_s16, %s1498_s0  ;;  %p1069_p5 = scmp.lt.s32.totalorder %s1067_s1, %s1062_s27 }
  0x24   : > { %p1065_p12 = pnand %p1064_p11, %p1063_p2 }
  0x25   : > { %p1070_p7 = por %p1069_p5, %p1068_p0 }
  0x26   : > { %p1066_p13 = pneg %p1065_p12 }
  0x28   : > { %p1071_p9 = pnand %p1070_p7, %p1066_p13 }
  0x2a   : > { %1074 = shalt.err (!%p1071_p9)
}
  0x2b   : > { %959 = dma.hbm_to_vmem [thread:$0]  (!%p1316_p10), %s408_s18, 128, %s410_s24, %s398_s30  }
  0x2c   : > { %418 = sbr.rel (%p1283_p8) target bundleno = 1902 (0x76e), region = 72  ;;  %s1333_s17 = sand.u32 (!%p1283_p8), 1, %s1152_s26  }
  0x2d   : > { %s927_s21 = sshll.u32 (!%p1283_p8), %s1333_s17, 3  ;;  %s421_s25 = scalar_lea.sflag (!%p1283_p8), [#allocation4], %s1333_s17 }
  0x2e   : > { %s424_s27 = scalar_lea.vmem (!%p1283_p8), [#allocation3], %s927_s21 }
  0x31   : > { %1135 = dma.done.wait (%p1270_p4), %s421_s25, 128  }
  0x32   : > { %1137 = vsyncadd (%p1270_p4), %s421_s25, 4294967168 }
  0x33   : > { %1139 = dma.done.wait (%p51_p1), [#allocation7], 16  }
  0x34   : > { %1141 = vsyncadd (%p51_p1), [#allocation7], 4294967280  ;;  %vm482_vm0 = vcmask 261120   ;;  %v1347_v0 = vld [vmem:[%s424_s27] sm:$0xff]  ;;  %v1163_v2 = vmov 32.0   ;;  %v523_v14 = vld [vmem:[%s1501_s3 + $0x18] sm:$0xff] }
  0x35   : > { %v483_v1 = vsel %vm482_vm0, %v1347_v0, 0.0  ;;  %1016 = vrcp.f32 %v1163_v2  ;;  %542 = vmatpush.msra.mxu0 %v523_v14  ;;  %v522_v15 = vld [vmem:[%s1501_s3 + $0x10] sm:$0xff]  ;;  %v521_v16 = vld [vmem:[%s1501_s3 + $0x8] sm:$0xff]  ;;  %v520_v17 = vld [vmem:[%s1501_s3] sm:$0xff]  ;;  %s1164_s27 = smov 112   ;;  %s1165_s14 = smov 96  }
  0x36   : > { %484 = vadd.xlane.f32.xlu0 %v483_v1  ;;  %v1008_v27 = vld [vmem:[#allocation6] ss:$0 sm:$0xff]  ;;  %v1009_v30 = vld [vmem:[%s1500_s2] ss:$0 sm:$0xff]  ;;  %s1166_s19 = smov 80   ;;  %vm553_vm5 = vcmask 130048  }
  0x37   : > { %543 = vmatpush.msra.mxu0 %v522_v15  ;;  %v1010_v33 = vld [vmem:[%s1502_s4] ss:$0 sm:$0xff]  ;;  %vm578_vm6 = vcmask 64512   ;;  %s1167_s30 = smov 48   ;;  %s1168_s16 = smov 64   ;;  %vm692_vm7 = vcmask 261248  }
  0x38   : > { %s1169_s18 = smov 16   ;;  %vm798_vm11 = vcmask 523264   ;;  %s941_s23 = sshll.u32 %s1261_s29, 3 }
  0x39   : > { %544 = vmatpush.msra.mxu0 %v521_v16  ;;  %s825_s29 = scalar_lea.sflag [#allocation5], %s1333_s17 }
  0x3b   : > { %v1017_v3 = vpop.eup %1016  ;;  %545 = vmatpush.msra.mxu0 %v520_v17 }
  0x3c   : > { %v487_v4 = vmul.f32 32.0, %v1017_v3  ;;  %vm491_vm1 = vweird.f32 %v1017_v3 }
  0x3e   : > { %v488_v5 = vsub.f32 1.0, %v487_v4 }
  0x40   : > { %v489_v6 = vmul.f32 %v1017_v3, %v488_v5 }
  0x42   : > { %v490_v7 = vadd.f32 %v1017_v3, %v489_v6  ;;  %v698_v6 = vld [vmem:[%s1503_s5 + $0x18] sm:$0xff] }
  0x44   : > { %v1351_v8 = vsel %vm491_vm1, %v1017_v3, %v490_v7  ;;  %v697_v7 = vld [vmem:[%s1503_s5 + $0x10] sm:$0xff] }
  0xa9   : > { %v485_v9 = vpop.xlane.xlu0 %484 }
  0xaa   : > { %v493_v10 = vmul.f32 %v1351_v8, %v485_v9  ;;  %v696_v9 = vld [vmem:[%s1503_s5 + $0x8] sm:$0xff] }
  0xac   : > { %v494_v11 = vsub.f32 %v1347_v0, %v493_v10  ;;  %v695_v10 = vld [vmem:[%s1503_s5] sm:$0xff] }
  0xae   : > { %v495_v12 = vmul.f32 %v494_v11, %v494_v11 }
  0xb0   : > { %v496_v13 = vsel %vm482_vm0, %v495_v12, 0.0 }
  0xb1   : > { %497 = vadd.xlane.f32.xlu0 %v496_v13  ;;  %v1011_v13 = vld [vmem:[%s1504_s6] ss:$0 sm:$0xff] }
 0x124   : > { %v498_v18 = vpop.xlane.xlu0 %497 }
 0x125   : > { %v499_v19 = vmul.f32 %v498_v18, %v1351_v8 }
 0x127   : > { %v500_v20 = vadd.f32 1e-05, %v499_v19 }
 0x129   : > { %1018 = vrsqrt.f32 %v500_v20  ;;  %vm507_vm3 = vweird.f32 %v500_v20 }
 0x12f   : > { %v1019_v21 = vpop.eup %1018 }
 0x130   : > { %v502_v22 = vmul.f32 %v1019_v21, %v500_v20  ;;  %vm508_vm2 = vweird.f32 %v1019_v21 }
 0x131   : > { %vm509_vm4 = vmor %vm507_vm3, %vm508_vm2 }
 0x132   : > { %v503_v23 = vmul.f32 %v1019_v21, %v502_v22 }
 0x134   : > { %v504_v24 = vmul.f32 0.5, %v503_v23  ;;  %v759_v23 = vld [vmem:[%s1507_s9 + $0x18] sm:$0xff] }
 0x136   : > { %v505_v25 = vsub.f32 1.5, %v504_v24  ;;  %v757_v24 = vld [vmem:[%s1507_s9 + $0x8] sm:$0xff] }
 0x138   : > { %v506_v26 = vmul.f32 %v1019_v21, %v505_v25  ;;  %v756_v25 = vld [vmem:[%s1507_s9] sm:$0xff] }
 0x13a   : > { %v510_v28 = vsel %vm509_vm4, %v1019_v21, %v506_v26  ;;  %v794_v26 = vld [vmem:[%s1509_s11 + $0x38] sm:$0xff] }
 0x13b   : > { %v511_v29 = vmul.f32 %v510_v28, %v494_v11  ;;  %810 = vmatpush.msrb.mxu0 %v794_v26  ;;  %v792_v28 = vld [vmem:[%s1509_s11 + $0x28] sm:$0xff] }
 0x13d   : > { %v515_v31 = vmul.f32 %v1008_v27, %v511_v29  ;;  %v793_v27 = vld [vmem:[%s1509_s11 + $0x30] sm:$0xff] }
 0x13e   : > { %811 = vmatpush.msrb.mxu0 %v793_v27 }
 0x13f   : > { %v519_v32 = vadd.f32 %v1009_v30, %v515_v31  ;;  %v791_v31 = vld [vmem:[%s1509_s11 + $0x20] sm:$0xff] }
 0x140   : > { %812 = vmatpush.msrb.mxu0 %v792_v28 }
 0x141   : > { %930 = vmatmul.msk.f32.vlgmr.msra.gmra.mxu0 %vm482_vm0, %v519_v32 }
 0x142   : > { %813 = vmatpush.msrb.mxu0 %v791_v31 }
 0x1be   : > { %v547_v34 = vpop.f32.mrf.mxu0 }
 0x1bf   : > { %v548_v35 = vadd.f32 %v1010_v33, %v547_v34  ;;  %v790_v33 = vld [vmem:[%s1509_s11 + $0x18] sm:$0xff] }
 0x1c0   : > { %814 = vmatpush.msrb.mxu0 %v790_v33 }
 0x1c1   : > { %620 = vrot.lane.b32.xlu2 %v548_v35, %s1164_s27  ;;  %551 = vrot.lane.b32.xlu1 %v548_v35, %s1165_s14  ;;  %s835_s27 = scalar_lea.hbm %s1511_s13, %s941_s23  ;;  %s472_s14 = scalar_lea.vmem [#allocation8], %s927_s21 }
 0x1c2   : > { %s1110_s21 = scalar_lea.hbm %s1511_s13, 16 }
 0x1c9   : > { %622 = vrot.lane.b32.xlu1 %v548_v35, %s1166_s19  ;;  %s837_s19 = sshll.u32 %s472_s14, 4  ;;  %s838_s19 = int_to_ptr.vmem [resolvable:$true] %s837_s19 }
 0x21b   : > { %v621_v38 = vpop.permute.xlu2 %620 }
 0x233   : > { %v552_v36 = vpop.permute.xlu1 %551 }
 0x234   : > { %931 = vmatpush.xpose.msk.msra.mxu1 %vm553_vm5, %v552_v36 }
 0x237   : > { %932 = vmatmul.msk.f32.vlgmr.msra.gmra.mxu1 %vm553_vm5, %v548_v35 }
 0x238   : > { %717 = vmatpush.msrb.mxu1 %v698_v6 }
 0x23a   : > { %718 = vmatpush.msrb.mxu1 %v697_v7 }
 0x23b   : > { %v623_v37 = vpop.permute.xlu1 %622 }
 0x23c   : > { %934 = vmatpush.xpose.msk.msra.mxu3 %vm553_vm5, %v623_v37  ;;  %719 = vmatpush.msrb.mxu1 %v696_v9 }
 0x23e   : > { %720 = vmatpush.msrb.mxu1 %v695_v10 }
 0x23f   : > { %935 = vmatmul.msk.f32.vlgmr.msra.gmra.mxu3 %vm553_vm5, %v621_v38 }
 0x240   : > { %778 = vmatpush.msrb.mxu3 %v759_v23 }
 0x2b4   : > { %v575_v39 = vpop.f32.mrf.mxu1 }
 0x2b5   : > { %v579_v40 = vsel %vm578_vm6, %v575_v39, -inf }
 0x2b6   : > { %580 = vmax.xlane.f32.xlu2 %v579_v40 }
 0x2c2   : > { %v645_v41 = vpop.f32.mrf.mxu3 }
 0x2c3   : > { %v648_v42 = vsel %vm578_vm6, %v645_v41, -inf }
 0x2c4   : > { %649 = vmax.xlane.f32.xlu0 %v648_v42  ;;  %v1013_v42 = vld [vmem:[%s1506_s8] ss:$0 sm:$0xff] }
 0x2ce   : > { %662 = vrot.lane.b32.xlu2 %v548_v35, %s1167_s30  ;;  %s839_s30 = sshll.u32 %s835_s27, 4  ;;  %s840_s30 = int_to_ptr.hbm [resolvable:$true] %s839_s30 }
 0x329   : > { %v581_v43 = vpop.xlane.xlu2 %580 }
 0x32a   : > { %v582_v44 = vsub.f32 %v575_v39, %v581_v43  ;;  %v1012_v39 = vld [vmem:[%s1505_s7] ss:$0 sm:$0xff] }
 0x32c   : > { %v583_v45 = vmul.f32 1.442695, %v582_v44 }
 0x32e   : > { %1020 = vpow2.f32 %v583_v45  ;;  %v789_v45 = vld [vmem:[%s1509_s11 + $0x10] sm:$0xff] }
 0x32f   : > { %815 = vmatpush.msrb.mxu0 %v789_v45 }
 0x331   : > { %v663_v1 = vpop.permute.xlu2 %662 }
 0x334   : > { %v1021_v46 = vpop.eup %1020 }
 0x335   : > { %v585_v47 = vsel %vm578_vm6, %v1021_v46, 0.0 }
 0x336   : > { %586 = vadd.xlane.f32.xlu1 %v585_v47  ;;  %v787_v47 = vld [vmem:[%s1509_s11] sm:$0xff] }
 0x337   : > { %v650_v48 = vpop.xlane.xlu0 %649 }
 0x338   : > { %v651_v49 = vsub.f32 %v645_v41, %v650_v48  ;;  %v1014_v48 = vld [vmem:[%s1508_s10] ss:$0 sm:$0xff] }
 0x33a   : > { %v652_v50 = vmul.f32 1.442695, %v651_v49 }
 0x33c   : > { %1022 = vpow2.f32 %v652_v50 }
 0x342   : > { %v1023_v51 = vpop.eup %1022 }
 0x343   : > { %v654_v52 = vsel %vm578_vm6, %v1023_v51, 0.0 }
 0x344   : > { %655 = vadd.xlane.f32.xlu0 %v654_v52  ;;  %v1015_v52 = vld [vmem:[%s1510_s12] ss:$0 sm:$0xff] }
 0x358   : > { %593 = vrot.lane.b32.xlu0 %v548_v35, %s1168_s16  ;;  %s1104_s16 = sshra.s32 %s840_s30, 4  ;;  %s1105_s16 = int_to_ptr.hbm [resolvable:$true] %s1104_s16 }
 0x359   : > { %p1111_p9 = scmp.lt.s32.totalorder %s1105_s16, %s1511_s13 }
 0x3a9   : > { %v587_v53 = vpop.xlane.xlu1 %586 }
 0x3aa   : > { %1024 = vrcp.f32 %v587_v53 }
 0x3b0   : > { %v1025_v55 = vpop.eup %1024 }
 0x3b1   : > { %v589_v56 = vmul.f32 %v1025_v55, %v587_v53 }
 0x3b3   : > { %v590_v57 = vsub.f32 2.0, %v589_v56 }
 0x3b5   : > { %v591_v59 = vmul.f32 %v1025_v55, %v590_v57 }
 0x3b7   : > { %v656_v54 = vpop.xlane.xlu0 %655  ;;  %v592_v63 = vmul.f32 %v1021_v46, %v591_v59  ;;  %v788_v46 = vld [vmem:[%s1509_s11 + $0x8] sm:$0xff] }
 0x3b8   : > { %1026 = vrcp.f32 %v656_v54  ;;  %816 = vmatpush.msrb.mxu0 %v788_v46 }
 0x3ba   : > { %817 = vmatpush.msrb.mxu0 %v787_v47 }
 0x3be   : > { %v1027_v58 = vpop.eup %1026 }
 0x3bf   : > { %v658_v60 = vmul.f32 %v1027_v58, %v656_v54 }
 0x3c1   : > { %v659_v61 = vsub.f32 2.0, %v658_v60 }
 0x3c3   : > { %v660_v2 = vmul.f32 %v1027_v58, %v659_v61 }
 0x3c5   : > { %v661_v3 = vmul.f32 %v1023_v51, %v660_v2 }
 0x3ca   : > { %v594_v62 = vpop.permute.xlu0 %593 }
 0x3cb   : > { %614 = vmatpush.msra.mxu2 %v594_v62 }
 0x3cc   : > { %933 = vmatmul.msk.f32.vlgmr.msra.gmra.mxu2 %vm578_vm6, %v592_v63 }
 0x3cd   : > { %683 = vmatpush.msrb.mxu2 %v663_v1 }
 0x3d4   : > { %936 = vmatmul.msk.f32.vlgmr.msrb.gmra.mxu2 %vm578_vm6, %v661_v3 }
 0x44f   : > { %v616_v4 = vpop.f32.mrf.mxu2 }
 0x450   : > { %619 = vst.msk [vmem:[#allocation2] sm:$0xff] %vm553_vm5, %v616_v4 }
 0x457   : > { %v685_v5 = vpop.f32.mrf.mxu2 }
 0x458   : > { %689 = vrot.lane.b32.xlu0 %v685_v5, %s1169_s18  ;;  %s1106_s18 = scalar_lea.hbm %s1105_s16, 8 }
 0x459   : > { %p1107_p1 = scmp.ne.s32.totalorder %s1105_s16, %s1106_s18  ;;  %p1112_p10 = scmp.lt.s32.totalorder %s1110_s21, %s1106_s18 }
 0x45b   : > { %p1108_p4 = pnand %p1107_p1, %p1306_p3  ;;  %p1113_p2 = por %p1112_p10, %p1111_p9 }
 0x45d   : > { %p1109_p8 = pneg %p1108_p4 }
 0x45f   : > { %p1114_p11 = pnand %p1113_p2, %p1109_p8 }
 0x4ca   : > { %v690_v11 = vpop.permute.xlu0 %689 }
 0x4cb   : > { %693 = vst.msk [vmem:[#allocation2] sm:$0xff] %vm692_vm7, %v690_v11 }
 0x4d2   : > { %v694_v12 = vld [vmem:[#allocation2] sm:$0xff] }
 0x4d3   : > { %937 = vmatmul.msk.f32.vlgmr.msrb.gmra.mxu1 %vm482_vm0, %v694_v12 }
 0x550   : > { %v722_v14 = vpop.f32.mrf.mxu1 }
 0x551   : > { %v723_v15 = vadd.f32 %v1011_v13, %v722_v14 }
 0x553   : > { %v1404_v16 = vadd.f32 %v723_v15, %v1347_v0  ;;  %v758_v0 = vld [vmem:[%s1507_s9 + $0x10] sm:$0xff] }
 0x554   : > { %779 = vmatpush.msrb.mxu3 %v758_v0 }
 0x555   : > { %v726_v17 = vsel %vm482_vm0, %v1404_v16, 0.0 }
 0x556   : > { %727 = vadd.xlane.f32.xlu1 %v726_v17  ;;  %780 = vmatpush.msrb.mxu3 %v757_v24 }
 0x558   : > { %781 = vmatpush.msrb.mxu3 %v756_v25 }
 0x5c9   : > { %v728_v18 = vpop.xlane.xlu1 %727 }
 0x5ca   : > { %v729_v19 = vmul.f32 %v728_v18, %v1351_v8 }
 0x5cc   : > { %v730_v20 = vsub.f32 %v1404_v16, %v729_v19 }
 0x5ce   : > { %v731_v21 = vmul.f32 %v730_v20, %v730_v20 }
 0x5d0   : > { %v732_v22 = vsel %vm482_vm0, %v731_v21, 0.0 }
 0x5d1   : > { %733 = vadd.xlane.f32.xlu0 %v732_v22 }
 0x644   : > { %v734_v29 = vpop.xlane.xlu0 %733 }
 0x645   : > { %v735_v30 = vmul.f32 %v734_v29, %v1351_v8 }
 0x647   : > { %v736_v32 = vadd.f32 1e-05, %v735_v30 }
 0x649   : > { %1028 = vrsqrt.f32 %v736_v32  ;;  %vm743_vm9 = vweird.f32 %v736_v32 }
 0x64f   : > { %v1029_v34 = vpop.eup %1028 }
 0x650   : > { %v738_v35 = vmul.f32 %v1029_v34, %v736_v32  ;;  %vm744_vm8 = vweird.f32 %v1029_v34 }
 0x651   : > { %vm745_vm10 = vmor %vm743_vm9, %vm744_vm8 }
 0x652   : > { %v739_v36 = vmul.f32 %v1029_v34, %v738_v35 }
 0x654   : > { %v740_v37 = vmul.f32 0.5, %v739_v36 }
 0x656   : > { %v741_v38 = vsub.f32 1.5, %v740_v37 }
 0x658   : > { %v742_v8 = vmul.f32 %v1029_v34, %v741_v38 }
 0x65a   : > { %v746_v40 = vsel %vm745_vm10, %v1029_v34, %v742_v8 }
 0x65b   : > { %v747_v41 = vmul.f32 %v746_v40, %v730_v20 }
 0x65d   : > { %v751_v43 = vmul.f32 %v1012_v39, %v747_v41 }
 0x65f   : > { %v755_v44 = vadd.f32 %v1013_v42, %v751_v43 }
 0x661   : > { %938 = vmatmul.msk.f32.vlgmr.msrb.gmra.mxu3 %vm482_vm0, %v755_v44 }
 0x6e4   : > { %v783_v49 = vpop.f32.mrf.mxu3 }
 0x6e5   : > { %v784_v50 = vadd.f32 %v1014_v48, %v783_v49 }
 0x6e7   : > { %v786_v51 = vmax.f32 %v784_v50, 0.0 }
 0x6e9   : > { %939 = vmatmul.msk.f32.vlgmr.msrb.gmra.mxu0 %vm798_vm11, %v786_v51 }
 0x766   : > { %v819_v53 = vpop.f32.mrf.mxu0 }
 0x767   : > { %v820_v54 = vadd.f32 %v1015_v52, %v819_v53 }
 0x769   : > { %v822_v55 = vadd.f32 %v820_v54, %v1404_v16 }
 0x76b   : > { %823 = vst.msk [vmem:[%s472_s14] sm:$0xff] %vm482_vm0, %v822_v55 }
 0x76c   : > { %1117 = shalt.err (!%p1114_p11)
}
 0x76d   : > { %950 = dma.vmem_to_hbm [thread:$0]  (%p1306_p3), %s838_s19, 128, %s840_s30, %s825_s29  }
 0x76e PF: > { %s1533_s17 = sld [smem:[#allocation12_spill]]  ;;  %p1535_p12 = scmp.ge.s32.totalorder %s1160_s28, 2 }
 0x770   : > { %p961_p13 = pnand %p1535_p12, %p1275_p6 }
 0x772   : > { %p962_p0 = pneg %p961_p13 }
 0x774   : > { %s851_s20 = sand.u32 1, %s1533_s17  }
 0x775   : > { %s852_s27 = scalar_lea.sflag [#allocation5], %s851_s20 }
 0x776   : > { %1143 = dma.done.wait (%p962_p0), %s852_s27, 128  }
 0x777   : > { %1145 = vsyncadd (%p962_p0), %s852_s27, 4294967168  ;;  %s1536_s28 = sld [smem:[#allocation15_spill]]  ;;  %s1539_s25 = smov %s1152_s26 }
 0x778   : > { %s1537_s14 = sld [smem:[#allocation13_spill]] }
 0x779   : > { %s1538_s27 = sld [smem:[#allocation16_spill]] }
 0x77d   : > { %p27_p5 = scmp.ge.s32.totalorder %s1536_s28, 4  }
 0x77e   : > { %s1540_s26 = smov %s1537_s14 }
 0x77f   :  { %29 = sbr.rel (!%p27_p5) target bundleno = 8 (0x8), region = 121 }
 0x784   :  { %858 = vsyncpa [#allocation4], 1 }
 0x785   :  { %860 = vsyncpa [#allocation4 + $0x1], 1 }
 0x786   :  { %861 = vsyncpa [#allocation7], 1 }
 0x787   :  { %862 = vsyncpa [#allocation5], 1 }
 0x788   :  { %864 = vsyncpa [#allocation5 + $0x1], 1 }

</bundles_post_ra>
